<compile_context>
chip_gen: v7x
topology: tpu7x:2x2x1
jax: 0.10.0
libtpu: 0.0.40
codegen_flags: <defaults>
</compile_context>

<pallas_src>
import functools

import jax
import jax.numpy as jnp
from jax.experimental import pallas as pl
from jax.experimental.pallas import tpu as pltpu


def _round_up(x, m):
    return ((x + m - 1) // m) * m


# ----------------------------------------------------------------------------
# Fused kernel: Conv2d(3x3, pad=1) + bias + ReLU + Flatten + Linear (per sample)
# ----------------------------------------------------------------------------
def _fused_kernel(x_ref, cw_ref, cb_ref, fcw_ref, fcb_ref, o_ref,
                  *, offsets, ml, pw, cout):
    # x_ref:   (1, Cin, P_EXT)   zero-margined flat padded image, channels first
    # cw_ref:  (9, Cout, Cin)    conv weight per 3x3 tap (resident in VMEM)
    # cb_ref:  (Cout, 1)         conv bias, broadcast over spatial lanes
    # fcw_ref: (Cout, PW, NPAD)  FC weight, (channel, padded-spatial, class);
    #                            zeros at invalid spatial positions / pad classes
    # fcb_ref: (1, NPAD)         FC bias (zero padded to 128 lanes)
    # o_ref:   (1, 1, NPAD)      per-sample logits, lane-dense 128-wide store

    # ---- Conv: 9 accumulating (Cout,Cin)@(Cin,PW) taps.  The spatial shift of
    # ---- each tap is a static lane-offset slice of the input ref. ----
    start0 = ml + offsets[0]
    acc = cb_ref[...] + jnp.dot(
        cw_ref[0], x_ref[0, :, start0:start0 + pw],
        preferred_element_type=jnp.float32)
    for k in range(1, len(offsets)):
        start = ml + offsets[k]
        acc = acc + jnp.dot(cw_ref[k], x_ref[0, :, start:start + pw],
                            preferred_element_type=jnp.float32)
    a = jnp.maximum(acc, 0.0)                       # (Cout, PW) activation in vregs

    # ---- Flatten + Linear: contract (channel, spatial) against the
    # ---- pre-permuted, spatially-embedded FC weight; one MXU dot per channel.
    # ---- Junk at padding/margin positions is killed by the zero FC weights.
    y = fcb_ref[...]                                # (1, NPAD)
    for c in range(cout):
        y = y + jnp.dot(a[c:c + 1, :], fcw_ref[c],
                        preferred_element_type=jnp.float32)
    o_ref[0] = y.astype(o_ref.dtype)


# ----------------------------------------------------------------------------
# Static weight preparation (done once; free at inference time)
# ----------------------------------------------------------------------------
def prepare_params(conv_w, conv_b, fc_w, fc_b, H, W):
    Cout, Cin, KH, KW = conv_w.shape
    num_classes = fc_w.shape[0]
    Hp, Wp = H + 2, W + 2
    P = Hp * Wp
    PW = _round_up(P, 128)          # working spatial width (lane multiple)
    NPAD = 128                      # lane-dense class dimension

    # Conv weight: (Cout,Cin,KH,KW) -> (KH*KW, Cout, Cin), tap index k = kh*3+kw
    cw_r = jnp.transpose(conv_w, (2, 3, 0, 1)).reshape(KH * KW, Cout, Cin)
    cb = conv_b.reshape(Cout, 1)

    # FC weight: columns (c,h,w) -> (c, padded-spatial q=hp*Wp+wp), classes
    # padded to 128.  Zeros everywhere the conv activation is invalid.
    fcw = fc_w.reshape(num_classes, Cout, H, W)
    fcw = jnp.transpose(fcw, (1, 2, 3, 0))                          # (Cout,H,W,N)
    fcw = jnp.pad(fcw, ((0, 0), (1, 1), (1, 1), (0, NPAD - num_classes)))
    fcw = fcw.reshape(Cout, P, NPAD)
    fcw3 = jnp.pad(fcw, ((0, 0), (0, PW - P), (0, 0)))              # (Cout,PW,128)

    fcb = jnp.pad(fc_b, (0, NPAD - num_classes)).reshape(1, NPAD)

    return (cw_r.astype(jnp.float32), cb.astype(jnp.float32),
            fcw3.astype(jnp.float32), fcb.astype(jnp.float32))


# ----------------------------------------------------------------------------
# Fused forward: single pallas_call, grid over the batch
# ----------------------------------------------------------------------------
def fused_forward(x, cw_r, cb, fcw3, fcb):
    B, Cin, H, W = x.shape
    KK, Cout, _ = cw_r.shape
    _, PW, NPAD = fcw3.shape
    Hp, Wp = H + 2, W + 2
    P = Hp * Wp
    ML = Wp + 1                                   # max |tap shift|
    P_EXT = _round_up(ML + PW + ML, 128)
    offsets = [(dh - 1) * Wp + (dw - 1) for dh in range(3) for dw in range(3)]

    # Cheap input plumbing: conv zero-pad + contiguous reshape + flat margins.
    # No transposes, no 9x im2col expansion in HBM.
    xp = jnp.pad(x, ((0, 0), (0, 0), (1, 1), (1, 1)))               # (B,Cin,Hp,Wp)
    x_flat = xp.reshape(B, Cin, P)
    x_ext = jnp.pad(x_flat, ((0, 0), (0, 0), (ML, P_EXT - P - ML)))  # (B,Cin,P_EXT)

    kernel = functools.partial(_fused_kernel, offsets=offsets, ml=ML,
                               pw=PW, cout=Cout)

    out = pl.pallas_call(
        kernel,
        out_shape=jax.ShapeDtypeStruct((B, 1, NPAD), jnp.float32),
        grid=(B,),
        in_specs=[
            pl.BlockSpec((1, Cin, P_EXT), lambda b: (b, 0, 0)),     # per-sample image
            pl.BlockSpec((KK, Cout, Cin), lambda b: (0, 0, 0)),     # resident weights
            pl.BlockSpec((Cout, 1), lambda b: (0, 0)),
            pl.BlockSpec((Cout, PW, NPAD), lambda b: (0, 0, 0)),
            pl.BlockSpec((1, NPAD), lambda b: (0, 0)),
        ],
        out_specs=pl.BlockSpec((1, 1, NPAD), lambda b: (b, 0, 0)),  # lane-dense
        compiler_params=pltpu.CompilerParams(
            dimension_semantics=("parallel",)),                     # 2 TCs on v7x
    )(x_ext, cw_r, cb, fcw3, fcb)
    return out[:, 0, :]                                             # (B, NPAD)


def model_forward(x, conv_w, conv_b, fc_w, fc_b):
    """Replicates the PyTorch wrapped-model forward (NCHW input)."""
    H, W = x.shape[2], x.shape[3]
    num_classes = fc_w.shape[0]
    params = prepare_params(conv_w, conv_b, fc_w, fc_b, H, W)
    return fused_forward(x, *params)[:, :num_classes]


# ----------------------------------------------------------------------------
# Pure-JAX reference for validation
# ----------------------------------------------------------------------------
def reference_forward(x, conv_w, conv_b, fc_w, fc_b):
    conv = jax.lax.conv_general_dilated(
        x, conv_w, window_strides=(1, 1), padding=((1, 1), (1, 1)),
        dimension_numbers=("NCHW", "OIHW", "NCHW"))
    conv = jnp.maximum(conv + conv_b[None, :, None, None], 0.0)
    flat = conv.reshape(x.shape[0], -1)
    return flat @ fc_w.T + fc_b[None, :]


if __name__ == "__main__":
    B, Cin, H, W = 2, 4, 16, 16
    Cout, num_classes = 8, 10

    key = jax.random.PRNGKey(0)
    k_x, k_cw, k_cb, k_fw, k_fb = jax.random.split(key, 5)

    x = jax.random.normal(k_x, (B, Cin, H, W), dtype=jnp.float32)
    conv_w = jax.random.normal(k_cw, (Cout, Cin, 3, 3), dtype=jnp.float32) * 0.1
    conv_b = jax.random.normal(k_cb, (Cout,), dtype=jnp.float32) * 0.1
    fc_w = jax.random.normal(k_fw, (num_classes, Cout * H * W), dtype=jnp.float32) * 0.05
    fc_b = jax.random.normal(k_fb, (num_classes,), dtype=jnp.float32) * 0.1

    # Static weight prep once; jit only the fused forward.
    params = prepare_params(conv_w, conv_b, fc_w, fc_b, H, W)
    fwd = jax.jit(fused_forward)
    y = fwd(x, *params)[:, :num_classes]
    y = jax.block_until_ready(y)

    y_ref = reference_forward(x, conv_w, conv_b, fc_w, fc_b)
    assert y.shape == (B, num_classes)
    assert jnp.allclose(y, y_ref, atol=2e-3, rtol=2e-3)

    print("KERNEL_OK")
</pallas_src>

<mosaic_0001>
module attributes {stable_mosaic.version = 11 : i64} {
  func.func @_fused_kernel(%arg0: i32, %arg1: memref<1x4x512xf32, #tpu.memory_space<vmem>>, %arg2: memref<9x8x4xf32, #tpu.memory_space<vmem>>, %arg3: memref<8x1xf32, #tpu.memory_space<vmem>>, %arg4: memref<8x384x128xf32, #tpu.memory_space<vmem>>, %arg5: memref<1x128xf32, #tpu.memory_space<vmem>>, %arg6: memref<1x1x128xf32, #tpu.memory_space<vmem>>) attributes {dimension_semantics = [#tpu.dimension_semantics<parallel>], iteration_bounds = array<i64: 2>, scalar_prefetch = 0 : i64, scratch_operands = 0 : i64, tpu.core_type = #tpu.core_type<tc>, window_params = [{transform_indices = @transform_0, window_bounds = array<i64: 1, 4, 512>}, {pipeline_mode = #tpu.pipeline_mode<synchronous>, transform_indices = @transform_1, window_bounds = array<i64: 9, 8, 4>}, {pipeline_mode = #tpu.pipeline_mode<synchronous>, transform_indices = @transform_2, window_bounds = array<i64: 8, 1>}, {pipeline_mode = #tpu.pipeline_mode<synchronous>, transform_indices = @transform_3, window_bounds = array<i64: 8, 384, 128>}, {pipeline_mode = #tpu.pipeline_mode<synchronous>, transform_indices = @transform_4, window_bounds = array<i64: 1, 128>}, {transform_indices = @transform_5, window_bounds = array<i64: 1, 1, 128>}]} {
    %c0 = arith.constant 0 : index
    %c0_0 = arith.constant 0 : index
    %0 = vector.load %arg3[%c0, %c0_0] : memref<8x1xf32, #tpu.memory_space<vmem>>, vector<8x1xf32>
    %c0_1 = arith.constant 0 : index
    %c0_2 = arith.constant 0 : index
    %c0_3 = arith.constant 0 : index
    %1 = vector.load %arg2[%c0_1, %c0_2, %c0_3] : memref<9x8x4xf32, #tpu.memory_space<vmem>>, vector<1x8x4xf32>
    %2 = vector.shape_cast %1 : vector<1x8x4xf32> to vector<8x4xf32>
    %c0_4 = arith.constant 0 : index
    %c0_5 = arith.constant 0 : index
    %c0_6 = arith.constant 0 : index
    %3 = vector.load %arg1[%c0_4, %c0_5, %c0_6] : memref<1x4x512xf32, #tpu.memory_space<vmem>>, vector<1x4x384xf32>
    %4 = vector.shape_cast %3 : vector<1x4x384xf32> to vector<4x384xf32>
    %cst = arith.constant dense<0.000000e+00> : vector<8x384xf32>
    %5 = tpu.matmul %2, %4, %cst {dimension_numbers = #tpu.dot_dimension_numbers<[1], [0], [0], [1], [0, 0, 1, 1], [], []>} : vector<8x4xf32>, vector<4x384xf32>, vector<8x384xf32> -> vector<8x384xf32>
    %6 = vector.broadcast %0 : vector<8x1xf32> to vector<8x384xf32>
    %7 = arith.addf %6, %5 : vector<8x384xf32>
    %c1 = arith.constant 1 : index
    %c0_7 = arith.constant 0 : index
    %c0_8 = arith.constant 0 : index
    %8 = vector.load %arg2[%c1, %c0_7, %c0_8] : memref<9x8x4xf32, #tpu.memory_space<vmem>>, vector<1x8x4xf32>
    %9 = vector.shape_cast %8 : vector<1x8x4xf32> to vector<8x4xf32>
    %c0_9 = arith.constant 0 : index
    %c0_10 = arith.constant 0 : index
    %c1_11 = arith.constant 1 : index
    %10 = vector.load %arg1[%c0_9, %c0_10, %c1_11] : memref<1x4x512xf32, #tpu.memory_space<vmem>>, vector<1x4x384xf32>
    %11 = vector.shape_cast %10 : vector<1x4x384xf32> to vector<4x384xf32>
    %cst_12 = arith.constant dense<0.000000e+00> : vector<8x384xf32>
    %12 = tpu.matmul %9, %11, %cst_12 {dimension_numbers = #tpu.dot_dimension_numbers<[1], [0], [0], [1], [0, 0, 1, 1], [], []>} : vector<8x4xf32>, vector<4x384xf32>, vector<8x384xf32> -> vector<8x384xf32>
    %13 = arith.addf %7, %12 : vector<8x384xf32>
    %c2 = arith.constant 2 : index
    %c0_13 = arith.constant 0 : index
    %c0_14 = arith.constant 0 : index
    %14 = vector.load %arg2[%c2, %c0_13, %c0_14] : memref<9x8x4xf32, #tpu.memory_space<vmem>>, vector<1x8x4xf32>
    %15 = vector.shape_cast %14 : vector<1x8x4xf32> to vector<8x4xf32>
    %c0_15 = arith.constant 0 : index
    %c0_16 = arith.constant 0 : index
    %c2_17 = arith.constant 2 : index
    %16 = vector.load %arg1[%c0_15, %c0_16, %c2_17] : memref<1x4x512xf32, #tpu.memory_space<vmem>>, vector<1x4x384xf32>
    %17 = vector.shape_cast %16 : vector<1x4x384xf32> to vector<4x384xf32>
    %cst_18 = arith.constant dense<0.000000e+00> : vector<8x384xf32>
    %18 = tpu.matmul %15, %17, %cst_18 {dimension_numbers = #tpu.dot_dimension_numbers<[1], [0], [0], [1], [0, 0, 1, 1], [], []>} : vector<8x4xf32>, vector<4x384xf32>, vector<8x384xf32> -> vector<8x384xf32>
    %19 = arith.addf %13, %18 : vector<8x384xf32>
    %c3 = arith.constant 3 : index
    %c0_19 = arith.constant 0 : index
    %c0_20 = arith.constant 0 : index
    %20 = vector.load %arg2[%c3, %c0_19, %c0_20] : memref<9x8x4xf32, #tpu.memory_space<vmem>>, vector<1x8x4xf32>
    %21 = vector.shape_cast %20 : vector<1x8x4xf32> to vector<8x4xf32>
    %c0_21 = arith.constant 0 : index
    %c0_22 = arith.constant 0 : index
    %c18 = arith.constant 18 : index
    %22 = vector.load %arg1[%c0_21, %c0_22, %c18] : memref<1x4x512xf32, #tpu.memory_space<vmem>>, vector<1x4x384xf32>
    %23 = vector.shape_cast %22 : vector<1x4x384xf32> to vector<4x384xf32>
    %cst_23 = arith.constant dense<0.000000e+00> : vector<8x384xf32>
    %24 = tpu.matmul %21, %23, %cst_23 {dimension_numbers = #tpu.dot_dimension_numbers<[1], [0], [0], [1], [0, 0, 1, 1], [], []>} : vector<8x4xf32>, vector<4x384xf32>, vector<8x384xf32> -> vector<8x384xf32>
    %25 = arith.addf %19, %24 : vector<8x384xf32>
    %c4 = arith.constant 4 : index
    %c0_24 = arith.constant 0 : index
    %c0_25 = arith.constant 0 : index
    %26 = vector.load %arg2[%c4, %c0_24, %c0_25] : memref<9x8x4xf32, #tpu.memory_space<vmem>>, vector<1x8x4xf32>
    %27 = vector.shape_cast %26 : vector<1x8x4xf32> to vector<8x4xf32>
    %c0_26 = arith.constant 0 : index
    %c0_27 = arith.constant 0 : index
    %c19 = arith.constant 19 : index
    %28 = vector.load %arg1[%c0_26, %c0_27, %c19] : memref<1x4x512xf32, #tpu.memory_space<vmem>>, vector<1x4x384xf32>
    %29 = vector.shape_cast %28 : vector<1x4x384xf32> to vector<4x384xf32>
    %cst_28 = arith.constant dense<0.000000e+00> : vector<8x384xf32>
    %30 = tpu.matmul %27, %29, %cst_28 {dimension_numbers = #tpu.dot_dimension_numbers<[1], [0], [0], [1], [0, 0, 1, 1], [], []>} : vector<8x4xf32>, vector<4x384xf32>, vector<8x384xf32> -> vector<8x384xf32>
    %31 = arith.addf %25, %30 : vector<8x384xf32>
    %c5 = arith.constant 5 : index
    %c0_29 = arith.constant 0 : index
    %c0_30 = arith.constant 0 : index
    %32 = vector.load %arg2[%c5, %c0_29, %c0_30] : memref<9x8x4xf32, #tpu.memory_space<vmem>>, vector<1x8x4xf32>
    %33 = vector.shape_cast %32 : vector<1x8x4xf32> to vector<8x4xf32>
    %c0_31 = arith.constant 0 : index
    %c0_32 = arith.constant 0 : index
    %c20 = arith.constant 20 : index
    %34 = vector.load %arg1[%c0_31, %c0_32, %c20] : memref<1x4x512xf32, #tpu.memory_space<vmem>>, vector<1x4x384xf32>
    %35 = vector.shape_cast %34 : vector<1x4x384xf32> to vector<4x384xf32>
    %cst_33 = arith.constant dense<0.000000e+00> : vector<8x384xf32>
    %36 = tpu.matmul %33, %35, %cst_33 {dimension_numbers = #tpu.dot_dimension_numbers<[1], [0], [0], [1], [0, 0, 1, 1], [], []>} : vector<8x4xf32>, vector<4x384xf32>, vector<8x384xf32> -> vector<8x384xf32>
    %37 = arith.addf %31, %36 : vector<8x384xf32>
    %c6 = arith.constant 6 : index
    %c0_34 = arith.constant 0 : index
    %c0_35 = arith.constant 0 : index
    %38 = vector.load %arg2[%c6, %c0_34, %c0_35] : memref<9x8x4xf32, #tpu.memory_space<vmem>>, vector<1x8x4xf32>
    %39 = vector.shape_cast %38 : vector<1x8x4xf32> to vector<8x4xf32>
    %c0_36 = arith.constant 0 : index
    %c0_37 = arith.constant 0 : index
    %c36 = arith.constant 36 : index
    %40 = vector.load %arg1[%c0_36, %c0_37, %c36] : memref<1x4x512xf32, #tpu.memory_space<vmem>>, vector<1x4x384xf32>
    %41 = vector.shape_cast %40 : vector<1x4x384xf32> to vector<4x384xf32>
    %cst_38 = arith.constant dense<0.000000e+00> : vector<8x384xf32>
    %42 = tpu.matmul %39, %41, %cst_38 {dimension_numbers = #tpu.dot_dimension_numbers<[1], [0], [0], [1], [0, 0, 1, 1], [], []>} : vector<8x4xf32>, vector<4x384xf32>, vector<8x384xf32> -> vector<8x384xf32>
    %43 = arith.addf %37, %42 : vector<8x384xf32>
    %c7 = arith.constant 7 : index
    %c0_39 = arith.constant 0 : index
    %c0_40 = arith.constant 0 : index
    %44 = vector.load %arg2[%c7, %c0_39, %c0_40] : memref<9x8x4xf32, #tpu.memory_space<vmem>>, vector<1x8x4xf32>
    %45 = vector.shape_cast %44 : vector<1x8x4xf32> to vector<8x4xf32>
    %c0_41 = arith.constant 0 : index
    %c0_42 = arith.constant 0 : index
    %c37 = arith.constant 37 : index
    %46 = vector.load %arg1[%c0_41, %c0_42, %c37] : memref<1x4x512xf32, #tpu.memory_space<vmem>>, vector<1x4x384xf32>
    %47 = vector.shape_cast %46 : vector<1x4x384xf32> to vector<4x384xf32>
    %cst_43 = arith.constant dense<0.000000e+00> : vector<8x384xf32>
    %48 = tpu.matmul %45, %47, %cst_43 {dimension_numbers = #tpu.dot_dimension_numbers<[1], [0], [0], [1], [0, 0, 1, 1], [], []>} : vector<8x4xf32>, vector<4x384xf32>, vector<8x384xf32> -> vector<8x384xf32>
    %49 = arith.addf %43, %48 : vector<8x384xf32>
    %c8 = arith.constant 8 : index
    %c0_44 = arith.constant 0 : index
    %c0_45 = arith.constant 0 : index
    %50 = vector.load %arg2[%c8, %c0_44, %c0_45] : memref<9x8x4xf32, #tpu.memory_space<vmem>>, vector<1x8x4xf32>
    %51 = vector.shape_cast %50 : vector<1x8x4xf32> to vector<8x4xf32>
    %c0_46 = arith.constant 0 : index
    %c0_47 = arith.constant 0 : index
    %c38 = arith.constant 38 : index
    %52 = vector.load %arg1[%c0_46, %c0_47, %c38] : memref<1x4x512xf32, #tpu.memory_space<vmem>>, vector<1x4x384xf32>
    %53 = vector.shape_cast %52 : vector<1x4x384xf32> to vector<4x384xf32>
    %cst_48 = arith.constant dense<0.000000e+00> : vector<8x384xf32>
    %54 = tpu.matmul %51, %53, %cst_48 {dimension_numbers = #tpu.dot_dimension_numbers<[1], [0], [0], [1], [0, 0, 1, 1], [], []>} : vector<8x4xf32>, vector<4x384xf32>, vector<8x384xf32> -> vector<8x384xf32>
    %55 = arith.addf %49, %54 : vector<8x384xf32>
    %cst_49 = arith.constant 0.000000e+00 : f32
    %56 = vector.broadcast %cst_49 : f32 to vector<8x384xf32>
    %57 = arith.maximumf %55, %56 : vector<8x384xf32>
    %c0_50 = arith.constant 0 : index
    %c0_51 = arith.constant 0 : index
    %58 = vector.load %arg5[%c0_50, %c0_51] : memref<1x128xf32, #tpu.memory_space<vmem>>, vector<1x128xf32>
    %59 = vector.extract_strided_slice %57 {offsets = [0, 0], sizes = [1, 384], strides = [1, 1]} : vector<8x384xf32> to vector<1x384xf32>
    %c0_52 = arith.constant 0 : index
    %c0_53 = arith.constant 0 : index
    %c0_54 = arith.constant 0 : index
    %60 = vector.load %arg4[%c0_52, %c0_53, %c0_54] : memref<8x384x128xf32, #tpu.memory_space<vmem>>, vector<1x384x128xf32>
    %61 = vector.shape_cast %60 : vector<1x384x128xf32> to vector<384x128xf32>
    %cst_55 = arith.constant dense<0.000000e+00> : vector<1x128xf32>
    %62 = tpu.matmul %59, %61, %cst_55 {dimension_numbers = #tpu.dot_dimension_numbers<[1], [0], [0], [1], [0, 0, 1, 1], [], []>} : vector<1x384xf32>, vector<384x128xf32>, vector<1x128xf32> -> vector<1x128xf32>
    %63 = arith.addf %58, %62 : vector<1x128xf32>
    %64 = vector.extract_strided_slice %57 {offsets = [1, 0], sizes = [1, 384], strides = [1, 1]} : vector<8x384xf32> to vector<1x384xf32>
    %c1_56 = arith.constant 1 : index
    %c0_57 = arith.constant 0 : index
    %c0_58 = arith.constant 0 : index
    %65 = vector.load %arg4[%c1_56, %c0_57, %c0_58] : memref<8x384x128xf32, #tpu.memory_space<vmem>>, vector<1x384x128xf32>
    %66 = vector.shape_cast %65 : vector<1x384x128xf32> to vector<384x128xf32>
    %cst_59 = arith.constant dense<0.000000e+00> : vector<1x128xf32>
    %67 = tpu.matmul %64, %66, %cst_59 {dimension_numbers = #tpu.dot_dimension_numbers<[1], [0], [0], [1], [0, 0, 1, 1], [], []>} : vector<1x384xf32>, vector<384x128xf32>, vector<1x128xf32> -> vector<1x128xf32>
    %68 = arith.addf %63, %67 : vector<1x128xf32>
    %69 = vector.extract_strided_slice %57 {offsets = [2, 0], sizes = [1, 384], strides = [1, 1]} : vector<8x384xf32> to vector<1x384xf32>
    %c2_60 = arith.constant 2 : index
    %c0_61 = arith.constant 0 : index
    %c0_62 = arith.constant 0 : index
    %70 = vector.load %arg4[%c2_60, %c0_61, %c0_62] : memref<8x384x128xf32, #tpu.memory_space<vmem>>, vector<1x384x128xf32>
    %71 = vector.shape_cast %70 : vector<1x384x128xf32> to vector<384x128xf32>
    %cst_63 = arith.constant dense<0.000000e+00> : vector<1x128xf32>
    %72 = tpu.matmul %69, %71, %cst_63 {dimension_numbers = #tpu.dot_dimension_numbers<[1], [0], [0], [1], [0, 0, 1, 1], [], []>} : vector<1x384xf32>, vector<384x128xf32>, vector<1x128xf32> -> vector<1x128xf32>
    %73 = arith.addf %68, %72 : vector<1x128xf32>
    %74 = vector.extract_strided_slice %57 {offsets = [3, 0], sizes = [1, 384], strides = [1, 1]} : vector<8x384xf32> to vector<1x384xf32>
    %c3_64 = arith.constant 3 : index
    %c0_65 = arith.constant 0 : index
    %c0_66 = arith.constant 0 : index
    %75 = vector.load %arg4[%c3_64, %c0_65, %c0_66] : memref<8x384x128xf32, #tpu.memory_space<vmem>>, vector<1x384x128xf32>
    %76 = vector.shape_cast %75 : vector<1x384x128xf32> to vector<384x128xf32>
    %cst_67 = arith.constant dense<0.000000e+00> : vector<1x128xf32>
    %77 = tpu.matmul %74, %76, %cst_67 {dimension_numbers = #tpu.dot_dimension_numbers<[1], [0], [0], [1], [0, 0, 1, 1], [], []>} : vector<1x384xf32>, vector<384x128xf32>, vector<1x128xf32> -> vector<1x128xf32>
    %78 = arith.addf %73, %77 : vector<1x128xf32>
    %79 = vector.extract_strided_slice %57 {offsets = [4, 0], sizes = [1, 384], strides = [1, 1]} : vector<8x384xf32> to vector<1x384xf32>
    %c4_68 = arith.constant 4 : index
    %c0_69 = arith.constant 0 : index
    %c0_70 = arith.constant 0 : index
    %80 = vector.load %arg4[%c4_68, %c0_69, %c0_70] : memref<8x384x128xf32, #tpu.memory_space<vmem>>, vector<1x384x128xf32>
    %81 = vector.shape_cast %80 : vector<1x384x128xf32> to vector<384x128xf32>
    %cst_71 = arith.constant dense<0.000000e+00> : vector<1x128xf32>
    %82 = tpu.matmul %79, %81, %cst_71 {dimension_numbers = #tpu.dot_dimension_numbers<[1], [0], [0], [1], [0, 0, 1, 1], [], []>} : vector<1x384xf32>, vector<384x128xf32>, vector<1x128xf32> -> vector<1x128xf32>
    %83 = arith.addf %78, %82 : vector<1x128xf32>
    %84 = vector.extract_strided_slice %57 {offsets = [5, 0], sizes = [1, 384], strides = [1, 1]} : vector<8x384xf32> to vector<1x384xf32>
    %c5_72 = arith.constant 5 : index
    %c0_73 = arith.constant 0 : index
    %c0_74 = arith.constant 0 : index
    %85 = vector.load %arg4[%c5_72, %c0_73, %c0_74] : memref<8x384x128xf32, #tpu.memory_space<vmem>>, vector<1x384x128xf32>
    %86 = vector.shape_cast %85 : vector<1x384x128xf32> to vector<384x128xf32>
    %cst_75 = arith.constant dense<0.000000e+00> : vector<1x128xf32>
    %87 = tpu.matmul %84, %86, %cst_75 {dimension_numbers = #tpu.dot_dimension_numbers<[1], [0], [0], [1], [0, 0, 1, 1], [], []>} : vector<1x384xf32>, vector<384x128xf32>, vector<1x128xf32> -> vector<1x128xf32>
    %88 = arith.addf %83, %87 : vector<1x128xf32>
    %89 = vector.extract_strided_slice %57 {offsets = [6, 0], sizes = [1, 384], strides = [1, 1]} : vector<8x384xf32> to vector<1x384xf32>
    %c6_76 = arith.constant 6 : index
    %c0_77 = arith.constant 0 : index
    %c0_78 = arith.constant 0 : index
    %90 = vector.load %arg4[%c6_76, %c0_77, %c0_78] : memref<8x384x128xf32, #tpu.memory_space<vmem>>, vector<1x384x128xf32>
    %91 = vector.shape_cast %90 : vector<1x384x128xf32> to vector<384x128xf32>
    %cst_79 = arith.constant dense<0.000000e+00> : vector<1x128xf32>
    %92 = tpu.matmul %89, %91, %cst_79 {dimension_numbers = #tpu.dot_dimension_numbers<[1], [0], [0], [1], [0, 0, 1, 1], [], []>} : vector<1x384xf32>, vector<384x128xf32>, vector<1x128xf32> -> vector<1x128xf32>
    %93 = arith.addf %88, %92 : vector<1x128xf32>
    %94 = vector.extract_strided_slice %57 {offsets = [7, 0], sizes = [1, 384], strides = [1, 1]} : vector<8x384xf32> to vector<1x384xf32>
    %c7_80 = arith.constant 7 : index
    %c0_81 = arith.constant 0 : index
    %c0_82 = arith.constant 0 : index
    %95 = vector.load %arg4[%c7_80, %c0_81, %c0_82] : memref<8x384x128xf32, #tpu.memory_space<vmem>>, vector<1x384x128xf32>
    %96 = vector.shape_cast %95 : vector<1x384x128xf32> to vector<384x128xf32>
    %cst_83 = arith.constant dense<0.000000e+00> : vector<1x128xf32>
    %97 = tpu.matmul %94, %96, %cst_83 {dimension_numbers = #tpu.dot_dimension_numbers<[1], [0], [0], [1], [0, 0, 1, 1], [], []>} : vector<1x384xf32>, vector<384x128xf32>, vector<1x128xf32> -> vector<1x128xf32>
    %98 = arith.addf %93, %97 : vector<1x128xf32>
    %c0_84 = arith.constant 0 : index
    %c0_85 = arith.constant 0 : index
    %c0_86 = arith.constant 0 : index
    %99 = vector.load %arg6[%c0_84, %c0_85, %c0_86] : memref<1x1x128xf32, #tpu.memory_space<vmem>>, vector<1x1x128xf32>
    %100 = vector.shape_cast %99 : vector<1x1x128xf32> to vector<1x128xf32>
    %101 = vector.shape_cast %98 : vector<1x128xf32> to vector<1x1x128xf32>
    tpu.vector_store %arg6[%c0_84, %c0_85, %c0_86], %101 {strides = array<i32>} : memref<1x1x128xf32, #tpu.memory_space<vmem>>, vector<1x1x128xf32>,
    return
  }
  func.func @transform_0(%arg0: i32) -> (i32, i32, i32) {
    %c0_i32 = arith.constant 0 : i32
    %c0_i32_0 = arith.constant 0 : i32
    %c0_i32_1 = arith.constant 0 : i32
    return %arg0, %c0_i32, %c0_i32_0 : i32, i32, i32
  }
  func.func @transform_1(%arg0: i32) -> (i32, i32, i32) {
    %c0_i32 = arith.constant 0 : i32
    %c0_i32_0 = arith.constant 0 : i32
    %c0_i32_1 = arith.constant 0 : i32
    %c0_i32_2 = arith.constant 0 : i32
    return %c0_i32, %c0_i32_0, %c0_i32_1 : i32, i32, i32
  }
  func.func @transform_2(%arg0: i32) -> (i32, i32) {
    %c0_i32 = arith.constant 0 : i32
    %c0_i32_0 = arith.constant 0 : i32
    %c0_i32_1 = arith.constant 0 : i32
    return %c0_i32, %c0_i32_0 : i32, i32
  }
  func.func @transform_3(%arg0: i32) -> (i32, i32, i32) {
    %c0_i32 = arith.constant 0 : i32
    %c0_i32_0 = arith.constant 0 : i32
    %c0_i32_1 = arith.constant 0 : i32
    %c0_i32_2 = arith.constant 0 : i32
    return %c0_i32, %c0_i32_0, %c0_i32_1 : i32, i32, i32
  }
  func.func @transform_4(%arg0: i32) -> (i32, i32) {
    %c0_i32 = arith.constant 0 : i32
    %c0_i32_0 = arith.constant 0 : i32
    %c0_i32_1 = arith.constant 0 : i32
    return %c0_i32, %c0_i32_0 : i32, i32
  }
  func.func @transform_5(%arg0: i32) -> (i32, i32, i32) {
    %c0_i32 = arith.constant 0 : i32
    %c0_i32_0 = arith.constant 0 : i32
    %c0_i32_1 = arith.constant 0 : i32
    return %arg0, %c0_i32, %c0_i32_0 : i32, i32, i32
  }
}

</mosaic_0001>

<bundles_post_ra>
// kernel: fused_forward.1
= control target key start
LH: loop header
LB: loop body
LE: loop exit
PB: predicated region body
PF: predicated region fallthrough
CT: control target
= control target key end

     0   :  { %10 = vsyncpa [#allocation3], 0  ;;  %s5444_s0 = inlined_call_operand.vmem [shape: f32[2,4,512], index: 0, kind: input, shape index: {}]   ;;  %s5445_s1 = inlined_call_operand.vmem [shape: f32[9,8,4], index: 1, kind: input, shape index: {}]   ;;  %s5446_s2 = inlined_call_operand.vmem [shape: f32[8,1], index: 2, kind: input, shape index: {}]   ;;  %s5447_s3 = inlined_call_operand.hbm [shape: f32[8,384,128], index: 3, kind: input, shape index: {}]   ;;  %s5448_s4 = inlined_call_operand.hbm [shape: f32[1,128], index: 4, kind: input, shape index: {}]   ;;  %s5449_s5 = inlined_call_operand.hbm [shape: f32[2,1,128], index: 5, kind: output, shape index: {}]  }
   0x1   :  { %11 = vsyncpa [#allocation6], 0 }
   0x2   :  { %12 = vsyncpa [#allocation4], 0 }
   0x3   :  { %14 = vsyncpa [#allocation4 + $0x1], 0  ;;  %s5044_s18 = smov 0   ;;  %s5046_s19 = smov 0  }
   0x4   :  { %s5048_s20 = smov 0   ;;  %s5050_s21 = smov 0  }
   0x5 LB: > { %s5065_s22 = sadd.s32 4294967295, %s4995_s21   ;;  %s3460_s23 = sadd.s32 4294967294, %s4995_s21   ;;  %s4995_s21 = sphi %s5050_s21, %s5467_s21   ;;  %s4991_s20 = sphi %s5048_s20, %s5466_s20   ;;  %s4987_s19 = sphi %s5046_s19, %s5465_s19   ;;  %s4983_s18 = sphi %s5044_s18, %s5464_s18  }
   0x6   : > { %s5069_s24 = sadd.s32 1, %s4995_s21   ;;  %s137_s25 = sadd.s32 1, %s4991_s20 }
   0x7   : > { %s134_s26 = ssub.s32 %s4995_s21, %s5069_s24  ;;  %p147_p0 = scmp.ne.s32.totalorder %s4991_s20, %s4987_s19 }
   0x8   : > { %p135_p1 = scmp.eq.s32.totalorder %s134_s26, 0  ;;  %p148_p2 = scmp.eq.s32.totalorder %s5065_s22, 1 }
   0x9   : > { %p153_p3 = scmp.ne.s32.totalorder %s4987_s19, %s4983_s18  ;;  %p154_p4 = scmp.eq.s32.totalorder %s3460_s23, 1 }
   0xa   : > { %s5080_s27 = scalar_select %p135_p1, %s4991_s20, %s137_s25  }
   0xb   : > { %p5082_p5 = por %p148_p2, %p147_p0  ;;  %p5086_p6 = por %p154_p4, %p153_p3 }
   0xc   : > { %p3461_p7 = scmp.ge.s32.totalorder %s4995_s21, 1  ;;  %p161_p8 = scmp.lt.s32.totalorder %s4995_s21, 3 }
   0xd   : > { %s5453_s28 = scalar_select %p5082_p5, 1, 0 }
   0xe   : > { %s5454_s29 = scalar_select %p5086_p6, 1, 0 }
   0xf   : > { %p5450_p9 = scmp.eq.s32.totalorder %s5065_s22, 0  ;;  %p5093_p10 = pnand %p3461_p7, %p161_p8 }
  0x10   : > { %s4997_s6 = smov [#allocation2]   ;;  %s4998_s9 = smov [#allocation5]  }
  0x11   : > { %s5455_s30 = scalar_select %p5093_p10, 1, 0 }
  0x12   : > { %s179_s7 = sshll.u32 %s4997_s6, 4  ;;  %p4802_p11 = pneg %p5093_p10  ;;  %s180_s7 = int_to_ptr.vmem [resolvable:$true] %s179_s7 }
  0x13   : > { %s193_s10 = sshll.u32 %s4998_s9, 4  ;;  %s4869_s13 = scalar_lea.hbm %s5447_s3, 49152  ;;  %s5105_s10 = int_to_ptr.vmem [resolvable:$true] %s193_s10 }
  0x14   : > { %p5101_p12 = pnand %p5450_p9, %p4802_p11  ;;  %p4870_p13 = scmp.ne.s32.totalorder %s5447_s3, %s4869_s13 }
  0x15   : > { %p4876_p3 = scmp.lt.u32.totalorder %s4869_s13, %s5447_s3 }
  0x16   : > { %p4871_p0 = pneg %p5101_p12 }
  0x18   : > { %p4872_p1 = pnand %p4871_p0, %p4870_p13 }
  0x1a   : > { %p4873_p2 = pneg %p4872_p1 }
  0x1c   : > { %p4878_p4 = pnand %p4876_p3, %p4873_p2 }
  0x1e   : > { %4881 = shalt.err (!%p4878_p4)
}
  0x1f   : > { %s4882_s23 = scalar_lea.vmem %s180_s7, 49152  ;;  %p4890_p9 = scmp.lt.s32.totalorder %s180_s7, %s180_s7 }
  0x20   : > { %p4883_p7 = scmp.ne.s32.totalorder %s180_s7, %s4882_s23  ;;  %p4891_p6 = scmp.lt.s32.totalorder %s4882_s23, %s4882_s23 }
  0x22   : > { %p4885_p8 = pnand %p4883_p7, %p4871_p0  ;;  %p4892_p5 = por %p4891_p6, %p4890_p9 }
  0x24   : > { %p4886_p11 = pneg %p4885_p8 }
  0x26   : > { %p4893_p10 = pnand %p4892_p5, %p4886_p11 }
  0x28   : > { %4896 = shalt.err (!%p4893_p10)
}
  0x29   : > { %s4999_s25 = smov 128   ;;  %s5000_s26 = smov 8  }
  0x2a   : > { %4805 = dma.hbm_to_vmem [thread:$0]  (!%p5101_p12), %s5447_s3, 49152, %s180_s7, [#allocation3], %s4999_s25, %s4999_s25, %s5000_s26  }
  0x2b   : > { %s4897_s13 = scalar_lea.hbm %s5448_s4, 16 }
  0x2c   : > { %p4898_p13 = scmp.ne.s32.totalorder %s5448_s4, %s4897_s13  ;;  %p4904_p9 = scmp.lt.u32.totalorder %s4897_s13, %s5448_s4 }
  0x2e   : > { %p4900_p5 = pnand %p4898_p13, %p4871_p0 }
  0x30   : > { %p4901_p6 = pneg %p4900_p5 }
  0x32   : > { %p4906_p10 = pnand %p4904_p9, %p4901_p6 }
  0x34   : > { %4909 = shalt.err (!%p4906_p10)
}
  0x35   : > { %s4910_s7 = scalar_lea.vmem %s5105_s10, 16  ;;  %s4917_s23 = scalar_lea.vmem %s5105_s10, 32 }
  0x36   : > { %p4911_p1 = scmp.ne.s32.totalorder %s5105_s10, %s4910_s7  ;;  %p4918_p4 = scmp.lt.s32.totalorder %s5105_s10, %s5105_s10 }
  0x37   : > { %p4919_p7 = scmp.lt.s32.totalorder %s4917_s23, %s4910_s7 }
  0x38   : > { %p4913_p2 = pnand %p4911_p1, %p4871_p0 }
  0x39   : > { %p4920_p8 = por %p4919_p7, %p4918_p4 }
  0x3a   : > { %p4914_p3 = pneg %p4913_p2 }
  0x3c   : > { %p4921_p11 = pnand %p4920_p8, %p4914_p3 }
  0x3e   : > { %4924 = shalt.err (!%p4921_p11)
}
  0x3f   : > { %4808 = dma.hbm_to_vmem [thread:$0]  (!%p5101_p12), %s5448_s4, 16, %s5105_s10, [#allocation6]  }
  0x40   : > { %p5457_p13 = scmp.ne.s32.totalorder %s5455_s30, 0 }
  0x41   : > { %p5458_p0 = scmp.eq.s32.totalorder (!%p5457_p13), %s5065_s22, 0 }
  0x42   : > { %214 = sbr.rel (%p5457_p13) target bundleno = 939 (0x3ab), region = 40 }
  0x49   : > { %4970 = dma.done.wait (%p5458_p0), [#allocation3], 49152   ;;  %p5459_p5 = pmov %p5458_p0 }
  0x4a   : > { %p5460_p6 = pmov %p5458_p0 }
  0x4b   : > { %4972 = vsyncadd (%p5459_p5), [#allocation3], 4294918144 }
  0x4c   : > { %4974 = dma.done.wait (%p5460_p6), [#allocation6], 16   ;;  %p5461_p9 = pmov %p5458_p0 }
  0x4d   : > { %p245_p10 = scmp.lt.s32.totalorder %s5065_s22, 1  ;;  %v5001_v0 = vmov 0.0   ;;  %vm5002_vm0 = vmmov 0   ;;  %vm261_vm1 = vcmask 1043456   ;;  %s5003_s11 = smov 127   ;;  %v251_v3 = vld [vmem:[%s5445_s1] sm:$0xff] }
  0x4e   : > { %4976 = vsyncadd (%p5461_p9), [#allocation6], 4294967280  ;;  %332 = vmatprep.mubr.f32.mxu0 %v5001_v0  ;;  %3961 = vmatprep.subr.mxu1 %v5001_v0  ;;  %vm257_vm2 = vcmask 31744   ;;  %s5004_s14 = smov 126   ;;  %s5005_s15 = smov 110   ;;  %v5010_v7 = vmov 0  }
  0x4f   : > { %s246_s30 = scalar_select %p245_p10, %s5065_s22, 1  ;;  %3963 = vmatprep.mubr.msk.f32.mxu1 %vm5002_vm0, %v5001_v0  ;;  %4866 = vset.pattern.permute.xlu0 %v5010_v7  ;;  %v250_v8 = vld [vmem:[%s5446_s2] sm:$0xff]  ;;  %vm433_vm3 = vcmask 1039360   ;;  %v3475_v14 = vld [vmem:[%s5445_s1 + $0x8] sm:$0xff]  ;;  %vm606_vm4 = vcmask 1031168   ;;  %v3481_v24 = vld [vmem:[%s5445_s1 + $0x10] sm:$0xff] }
  0x50   : > { %s5006_s16 = smov 109   ;;  %s5007_s17 = smov 108   ;;  %vm779_vm5 = vcmask 900096   ;;  %v3487_v32 = vld [vmem:[%s5445_s1 + $0x18] sm:$0xff]  ;;  %vm952_vm6 = vcmask 891904   ;;  %v3493_v40 = vld [vmem:[%s5445_s1 + $0x20] sm:$0xff] }
  0x51   : > { %s3526_s8 = sshll.u32 %s246_s30, 4  ;;  %s5008_s7 = smov 92   ;;  %vm1125_vm7 = vcmask 883712   ;;  %v3499_v48 = vld [vmem:[%s5445_s1 + $0x28] sm:$0xff]  ;;  %vm1298_vm8 = vcmask 752640   ;;  %v3505_v56 = vld [vmem:[%s5445_s1 + $0x30] sm:$0xff] }
  0x52   : > { %s249_s9 = scalar_lea.vmem %s5444_s0, %s3526_s8  ;;  %s5009_s23 = smov 91   ;;  %vm1471_vm9 = vcmask 744448   ;;  %vm1644_vm10 = vcmask 736256  }
  0x53   : > { %v419_v1 = vld [vmem:[%s249_s9] sm:$0xff]  ;;  %v253_v4 = vld [vmem:[%s249_s9 + $0x8] sm:$0xf]  ;;  %s5011_s25 = smov 90   ;;  %s243_s8 = sand.u32 1, %s4987_s19  }
  0x54   : > { %425 = vrot.lane.b32.xlu1 %v419_v1, %s5003_s11  ;;  %v423_v2 = vcombine.high %v419_v1, %v419_v1  ;;  %v593_v5 = vld [vmem:[%s249_s9 + $0x8] sm:$0xff]  ;;  %3962 = vmatpush3.msk.msra.mxu1 %vm261_vm1, %v253_v4  ;;  %v1821_v4 = vld [vmem:[#allocation2 + $0x80] sm:$0xff]  ;;  %s3523_s10 = sshll.u32 %s5065_s22, 4  ;;  %s244_s6 = scalar_lea.vmem [#allocation7], %s243_s8 }
  0x55   : > { %3964 = vmatmul.mubr.msk.f32.vlgmr.msra.gmra.mrb[0].mxu1 %vm257_vm2, %v251_v3  ;;  %v597_v6 = vcombine.high %v593_v5, %v593_v5  ;;  %3966 = vmatprep.subr.mxu1 %v5001_v0  ;;  %s3383_s9 = sshll.u32 %s244_s6, 4  ;;  %s5402_s13 = scalar_lea.hbm %s5449_s5, %s3523_s10  ;;  %s5404_s9 = int_to_ptr.vmem [resolvable:$true] %s3383_s9 }
  0x56   : > { %427 = vrot.lane.b32.xlu0 %v423_v2, %s5003_s11  ;;  %3470 = vmatprep.subr.msk.mxu0 %vm261_vm1, %v423_v2  ;;  %p5462_p1 = scmp.ne.s32.totalorder %s5453_s28, 0  ;;  %s5013_s22 = smov [#allocation7]  }
  0x57   : > { %3471 = vmatpush1.msk.msra.mxu0 %vm261_vm1, %v419_v1  ;;  %3968 = vmatprep.mubr.msk.f32.mxu1 %vm5002_vm0, %v5001_v0 }
  0x58   : > { %602 = vrot.lane.b32.xlu1 %v593_v5, %s5004_s14  ;;  %3472 = vmatmul.mubr.msk.f32.vlgmr.msra.gmra.mrb[0].mxu0 %vm257_vm2, %v251_v3 }
  0x59   : > { %510 = vmatprep.mubr.f32.mxu0 %v5001_v0 }
  0x5a   : > { %429 = vrot.lane.b32.xlu0 %v593_v5, %s5003_s11 }
  0x5c   : > { %431 = vrot.lane.b32.xlu1 %v597_v6, %s5003_s11 }
  0x5e   : > { %600 = vrot.lane.b32.xlu0 %v423_v2, %s5004_s14 }
  0x60   : > { %604 = vrot.lane.b32.xlu1 %v597_v6, %s5004_s14 }
  0x62   : > { %598 = vrot.lane.b32.xlu0 %v419_v1, %s5004_s14  ;;  %s3371_s14 = scalar_lea.sflag [#allocation4], %s243_s8 }
  0x64   : > { %775 = vrot.lane.b32.xlu1 %v593_v5, %s5005_s15 }
  0x66   : > { %773 = vrot.lane.b32.xlu0 %v423_v2, %s5005_s15 }
  0x68   : > { %777 = vrot.lane.b32.xlu1 %v597_v6, %s5005_s15 }
  0x6a   : > { %771 = vrot.lane.b32.xlu0 %v419_v1, %s5005_s15  ;;  %s4925_s15 = scalar_lea.vmem %s5404_s9, 16 }
  0x6b   : > { %p4926_p12 = scmp.ne.s32.totalorder %s5404_s9, %s4925_s15 }
  0x6c   : > { %948 = vrot.lane.b32.xlu1 %v593_v5, %s5006_s16 }
  0x6d   : > { %p4927_p2 = pnand %p4926_p12, %p5462_p1 }
  0x6e   : > { %946 = vrot.lane.b32.xlu0 %v423_v2, %s5006_s16 }
  0x6f   : > { %p4928_p3 = pneg %p4927_p2 }
  0x70   : > { %950 = vrot.lane.b32.xlu1 %v597_v6, %s5006_s16 }
  0x72   : > { %944 = vrot.lane.b32.xlu0 %v419_v1, %s5006_s16  ;;  %s4929_s16 = sshll.u32 %s5013_s22, 4  ;;  %s4930_s16 = int_to_ptr.vmem [resolvable:$false] %s4929_s16 }
  0x73   : > { %p4932_p4 = scmp.lt.s32.totalorder %s5404_s9, %s4930_s16 }
  0x74   : > { %1121 = vrot.lane.b32.xlu1 %v593_v5, %s5007_s17 }
  0x76   : > { %1119 = vrot.lane.b32.xlu0 %v423_v2, %s5007_s17 }
  0x78   : > { %1123 = vrot.lane.b32.xlu1 %v597_v6, %s5007_s17 }
  0x7a   : > { %1117 = vrot.lane.b32.xlu0 %v419_v1, %s5007_s17  ;;  %s4931_s17 = scalar_lea.vmem %s4930_s16, 32 }
  0x7b   : > { %p4933_p7 = scmp.lt.s32.totalorder %s4931_s17, %s4925_s15 }
  0x7c   : > { %1294 = vrot.lane.b32.xlu1 %v593_v5, %s5008_s7 }
  0x7d   : > { %p4934_p8 = por %p4933_p7, %p4932_p4 }
  0x7e   : > { %1292 = vrot.lane.b32.xlu0 %v423_v2, %s5008_s7 }
  0x7f   : > { %p4935_p11 = pnand %p4934_p8, %p4928_p3 }
  0x80   : > { %1296 = vrot.lane.b32.xlu1 %v597_v6, %s5008_s7 }
  0x82   : > { %1290 = vrot.lane.b32.xlu0 %v419_v1, %s5008_s7 }
  0x84   : > { %1467 = vrot.lane.b32.xlu1 %v593_v5, %s5009_s23 }
  0x86   : > { %1465 = vrot.lane.b32.xlu0 %v423_v2, %s5009_s23 }
  0x88   : > { %1469 = vrot.lane.b32.xlu1 %v597_v6, %s5009_s23 }
  0x8a   : > { %1463 = vrot.lane.b32.xlu0 %v419_v1, %s5009_s23 }
  0x8c   : > { %1640 = vrot.lane.b32.xlu1 %v593_v5, %s5011_s25  ;;  %v1822_v5 = vld [vmem:[#allocation2 + $0x88] sm:$0xff] }
  0x8e   : > { %1638 = vrot.lane.b32.xlu0 %v423_v2, %s5011_s25 }
  0x90   : > { %1642 = vrot.lane.b32.xlu1 %v597_v6, %s5011_s25 }
  0x92   : > { %1636 = vrot.lane.b32.xlu0 %v419_v1, %s5011_s25  ;;  %v3511_v1 = vld [vmem:[%s5445_s1 + $0x38] sm:$0xff] }
  0x96   : > { %411 = vperm.xlu0 %4866, %v250_v8   ;;  %v1837_v8 = vld [vmem:[#allocation2 + $0x100] sm:$0xff] }
  0xc6   : > { %v426_v9 = vpop.permute.xlu1 %425 }
  0xc8   : > { %v428_v10 = vpop.permute.xlu0 %427 }
  0xc9   : > { %v434_v15 = vsel %vm433_vm3, %v426_v9, %v428_v10  ;;  %v1805_v9 = vld [vmem:[#allocation2] sm:$0xff] }
  0xca   : > { %v603_v11 = vpop.permute.xlu1 %602 }
  0xcc   : > { %v430_v12 = vpop.permute.xlu0 %429 }
  0xcd   : > { %v435_v13 = vsel %vm433_vm3, %v428_v10, %v430_v12  ;;  %v1806_v10 = vld [vmem:[#allocation2 + $0x8] sm:$0xff] }
  0xce   : > { %v432_v16 = vpop.permute.xlu1 %431  ;;  %3476 = vmatprep.subr.msk.mxu0 %vm261_vm1, %v435_v13  ;;  %v1838_v13 = vld [vmem:[#allocation2 + $0x108] sm:$0xff] }
  0xcf   : > { %v436_v17 = vsel %vm433_vm3, %v430_v12, %v432_v16  ;;  %3477 = vmatpush1.msk.msra.mxu0 %vm261_vm1, %v434_v15  ;;  %v4286_v12 = vpack.c.bf16 %v1822_v5, %v1821_v4  ;;  %v1824_v15 = vld [vmem:[#allocation2 + $0x98] sm:$0xff]  ;;  %v1817_v5 = vld [vmem:[#allocation2 + $0x60] sm:$0xff] }
  0xd0   : > { %v601_v18 = vpop.permute.xlu0 %600  ;;  %3478 = vmatmul.mubr.msk.f32.vlgmr.msra.gmra.mrb[0].mxu0 %vm257_vm2, %v3475_v14  ;;  %3967 = vmatpush3.msk.msra.mxu1 %vm261_vm1, %v436_v17 }
  0xd1   : > { %v608_v19 = vsel %vm606_vm4, %v601_v18, %v603_v11  ;;  %3969 = vmatmul.mubr.msk.f32.vlgmr.msra.gmra.mrb[0].mxu1 %vm257_vm2, %v3475_v14  ;;  %3971 = vmatprep.subr.mxu1 %v5001_v0  ;;  %v1823_v14 = vld [vmem:[#allocation2 + $0x90] sm:$0xff] }
  0xd2   : > { %v605_v20 = vpop.permute.xlu1 %604  ;;  %3482 = vmatprep.subr.msk.mxu0 %vm261_vm1, %v608_v19  ;;  %683 = vmatprep.mubr.f32.mxu0 %v5001_v0  ;;  %v5012_v19 = vmov 0.0|0.0  }
  0xd3   : > { %v609_v21 = vsel %vm606_vm4, %v603_v11, %v605_v20  ;;  %3973 = vmatprep.mubr.msk.f32.mxu1 %vm5002_vm0, %v5001_v0  ;;  %v4288_v20 = vpack.c.bf16 %v1806_v10, %v1805_v9 }
  0xd4   : > { %v599_v22 = vpop.permute.xlu0 %598  ;;  %3972 = vmatpush3.msk.msra.mxu1 %vm261_vm1, %v609_v21  ;;  %v4319_v21 = vpack.c.bf16 %v1838_v13, %v1837_v8  ;;  %v1850_v8 = vld [vmem:[#allocation2 + $0x168] sm:$0xff]  ;;  %v1851_v13 = vld [vmem:[#allocation2 + $0x170] sm:$0xff] }
  0xd5   : > { %v607_v23 = vsel %vm606_vm4, %v599_v22, %v601_v18  ;;  %3976 = vmatprep.subr.mxu1 %v5001_v0  ;;  %v3517_v18 = vld [vmem:[%s5445_s1 + $0x40] sm:$0xff]  ;;  %v4290_v22 = vpack.c.bf16 %v1824_v15, %v1823_v14  ;;  %v1852_v15 = vld [vmem:[#allocation2 + $0x178] sm:$0xff] }
  0xd6   : > { %3483 = vmatpush1.msk.msra.mxu0 %vm261_vm1, %v607_v23  ;;  %v776_v25 = vpop.permute.xlu1 %775  ;;  %v1839_v23 = vld [vmem:[#allocation2 + $0x110] sm:$0xff] }
  0xd8   : > { %v774_v26 = vpop.permute.xlu0 %773  ;;  %3484 = vmatmul.mubr.msk.f32.vlgmr.msra.gmra.mrb[0].mxu0 %vm257_vm2, %v3481_v24 }
  0xd9   : > { %v781_v27 = vsel %vm779_vm5, %v774_v26, %v776_v25  ;;  %3974 = vmatmul.mubr.msk.f32.vlgmr.msra.gmra.mrb[0].mxu1 %vm257_vm2, %v3481_v24  ;;  %856 = vmatprep.mubr.f32.mxu0 %v5001_v0  ;;  %v1807_v24 = vld [vmem:[#allocation2 + $0x10] sm:$0xff] }
  0xda   : > { %3488 = vmatprep.subr.msk.mxu0 %vm261_vm1, %v781_v27  ;;  %v778_v28 = vpop.permute.xlu1 %777  ;;  %3978 = vmatprep.mubr.msk.f32.mxu1 %vm5002_vm0, %v5001_v0  ;;  %v1825_v27 = vld [vmem:[#allocation2 + $0xa0] sm:$0xff] }
  0xdb   : > { %v782_v29 = vsel %vm779_vm5, %v776_v25, %v778_v28  ;;  %v1808_v25 = vld [vmem:[#allocation2 + $0x18] sm:$0xff]  ;;  %v1826_v28 = vld [vmem:[#allocation2 + $0xa8] sm:$0xff] }
  0xdc   : > { %v772_v30 = vpop.permute.xlu0 %771  ;;  %3977 = vmatpush3.msk.msra.mxu1 %vm261_vm1, %v782_v29  ;;  %v4292_v29 = vpack.c.bf16 %v1808_v25, %v1807_v24 }
  0xdd   : > { %v780_v31 = vsel %vm779_vm5, %v772_v30, %v774_v26  ;;  %3981 = vmatprep.subr.mxu1 %v5001_v0  ;;  %v1840_v26 = vld [vmem:[#allocation2 + $0x118] sm:$0xff] }
  0xde   : > { %3489 = vmatpush1.msk.msra.mxu0 %vm261_vm1, %v780_v31  ;;  %v949_v33 = vpop.permute.xlu1 %948  ;;  %v4322_v30 = vpack.c.bf16 %v1840_v26, %v1839_v23  ;;  %v4294_v31 = vpack.c.bf16 %v1826_v28, %v1825_v27  ;;  %v2027_v26 = vld [vmem:[#allocation2 + $0x280] sm:$0xff]  ;;  %v2028_v27 = vld [vmem:[#allocation2 + $0x288] sm:$0xff] }
  0xe0   : > { %v947_v34 = vpop.permute.xlu0 %946  ;;  %3490 = vmatmul.mubr.msk.f32.vlgmr.msra.gmra.mrb[0].mxu0 %vm257_vm2, %v3487_v32 }
  0xe1   : > { %v954_v35 = vsel %vm952_vm6, %v947_v34, %v949_v33  ;;  %3979 = vmatmul.mubr.msk.f32.vlgmr.msra.gmra.mrb[0].mxu1 %vm257_vm2, %v3487_v32  ;;  %1029 = vmatprep.mubr.f32.mxu0 %v5001_v0  ;;  %v1841_v32 = vld [vmem:[#allocation2 + $0x120] sm:$0xff] }
  0xe2   : > { %3494 = vmatprep.subr.msk.mxu0 %vm261_vm1, %v954_v35  ;;  %v951_v36 = vpop.permute.xlu1 %950  ;;  %3983 = vmatprep.mubr.msk.f32.mxu1 %vm5002_vm0, %v5001_v0  ;;  %v1842_v35 = vld [vmem:[#allocation2 + $0x128] sm:$0xff] }
  0xe3   : > { %v955_v37 = vsel %vm952_vm6, %v949_v33, %v951_v36  ;;  %v1809_v33 = vld [vmem:[#allocation2 + $0x20] sm:$0xff]  ;;  %v1827_v36 = vld [vmem:[#allocation2 + $0xb0] sm:$0xff] }
  0xe4   : > { %v945_v38 = vpop.permute.xlu0 %944  ;;  %3982 = vmatpush3.msk.msra.mxu1 %vm261_vm1, %v955_v37  ;;  %v1828_v37 = vld [vmem:[#allocation2 + $0xb8] sm:$0xff] }
  0xe5   : > { %v953_v39 = vsel %vm952_vm6, %v945_v38, %v947_v34  ;;  %3986 = vmatprep.subr.mxu1 %v5001_v0  ;;  %v1810_v34 = vld [vmem:[#allocation2 + $0x28] sm:$0xff] }
  0xe6   : > { %3495 = vmatpush1.msk.msra.mxu0 %vm261_vm1, %v953_v39  ;;  %v1122_v41 = vpop.permute.xlu1 %1121  ;;  %v4296_v38 = vpack.c.bf16 %v1810_v34, %v1809_v33  ;;  %v4325_v39 = vpack.c.bf16 %v1842_v35, %v1841_v32  ;;  %v1996_v32 = vld [vmem:[#allocation2 + $0x188] sm:$0xff] }
  0xe8   : > { %v1120_v42 = vpop.permute.xlu0 %1119  ;;  %3496 = vmatmul.mubr.msk.f32.vlgmr.msra.gmra.mrb[0].mxu0 %vm257_vm2, %v3493_v40 }
  0xe9   : > { %v1127_v43 = vsel %vm1125_vm7, %v1120_v42, %v1122_v41  ;;  %3984 = vmatmul.mubr.msk.f32.vlgmr.msra.gmra.mrb[0].mxu1 %vm257_vm2, %v3493_v40  ;;  %1202 = vmatprep.mubr.f32.mxu0 %v5001_v0  ;;  %v4298_v40 = vpack.c.bf16 %v1828_v37, %v1827_v36  ;;  %v2013_v36 = vld [vmem:[#allocation2 + $0x210] sm:$0xff]  ;;  %v2014_v37 = vld [vmem:[#allocation2 + $0x218] sm:$0xff] }
  0xea   : > { %3500 = vmatprep.subr.msk.mxu0 %vm261_vm1, %v1127_v43  ;;  %v1124_v44 = vpop.permute.xlu1 %1123  ;;  %3988 = vmatprep.mubr.msk.f32.mxu1 %vm5002_vm0, %v5001_v0  ;;  %v1812_v43 = vld [vmem:[#allocation2 + $0x38] sm:$0xff] }
  0xeb   : > { %v1128_v45 = vsel %vm1125_vm7, %v1122_v41, %v1124_v44  ;;  %v1843_v41 = vld [vmem:[#allocation2 + $0x130] sm:$0xff]  ;;  %v1844_v44 = vld [vmem:[#allocation2 + $0x138] sm:$0xff] }
  0xec   : > { %v1118_v46 = vpop.permute.xlu0 %1117  ;;  %3987 = vmatpush3.msk.msra.mxu1 %vm261_vm1, %v1128_v45  ;;  %v1829_v45 = vld [vmem:[#allocation2 + $0xc0] sm:$0xff] }
  0xed   : > { %v1126_v47 = vsel %vm1125_vm7, %v1118_v46, %v1120_v42  ;;  %3991 = vmatprep.subr.mxu1 %v5001_v0  ;;  %v1811_v42 = vld [vmem:[#allocation2 + $0x30] sm:$0xff]  ;;  %v1830_v46 = vld [vmem:[#allocation2 + $0xc8] sm:$0xff] }
  0xee   : > { %3501 = vmatpush1.msk.msra.mxu0 %vm261_vm1, %v1126_v47  ;;  %v1295_v49 = vpop.permute.xlu1 %1294  ;;  %v4300_v47 = vpack.c.bf16 %v1812_v43, %v1811_v42  ;;  %v2029_v42 = vld [vmem:[#allocation2 + $0x290] sm:$0xff]  ;;  %v2030_v43 = vld [vmem:[#allocation2 + $0x298] sm:$0xff] }
  0xf0   : > { %v1293_v50 = vpop.permute.xlu0 %1292  ;;  %3502 = vmatmul.mubr.msk.f32.vlgmr.msra.gmra.mrb[0].mxu0 %vm257_vm2, %v3499_v48 }
  0xf1   : > { %v1300_v51 = vsel %vm1298_vm8, %v1293_v50, %v1295_v49  ;;  %3989 = vmatmul.mubr.msk.f32.vlgmr.msra.gmra.mrb[0].mxu1 %vm257_vm2, %v3499_v48  ;;  %1375 = vmatprep.mubr.f32.mxu0 %v5001_v0  ;;  %v4328_v48 = vpack.c.bf16 %v1844_v44, %v1843_v41 }
  0xf2   : > { %3506 = vmatprep.subr.msk.mxu0 %vm261_vm1, %v1300_v51  ;;  %v1297_v52 = vpop.permute.xlu1 %1296  ;;  %3993 = vmatprep.mubr.msk.f32.mxu1 %vm5002_vm0, %v5001_v0  ;;  %v1813_v51 = vld [vmem:[#allocation2 + $0x40] sm:$0xff] }
  0xf3   : > { %v1301_v53 = vsel %vm1298_vm8, %v1295_v49, %v1297_v52  ;;  %v4302_v49 = vpack.c.bf16 %v1830_v46, %v1829_v45  ;;  %v1814_v52 = vld [vmem:[#allocation2 + $0x48] sm:$0xff]  ;;  %v4346_v45 = vpack.c.bf16 %v2014_v37, %v2013_v36  ;;  %v1997_v46 = vld [vmem:[#allocation2 + $0x190] sm:$0xff]  ;;  %v2042_v37 = vld [vmem:[#allocation2 + $0x2f8] sm:$0xff] }
  0xf4   : > { %v1291_v54 = vpop.permute.xlu0 %1290  ;;  %3992 = vmatpush3.msk.msra.mxu1 %vm261_vm1, %v1301_v53  ;;  %v1846_v53 = vld [vmem:[#allocation2 + $0x148] sm:$0xff]  ;;  %v2041_v36 = vld [vmem:[#allocation2 + $0x2f0] sm:$0xff] }
  0xf5   : > { %v1299_v55 = vsel %vm1298_vm8, %v1291_v54, %v1293_v50  ;;  %3996 = vmatprep.subr.mxu1 %v5001_v0  ;;  %v1845_v50 = vld [vmem:[#allocation2 + $0x140] sm:$0xff]  ;;  %v1831_v54 = vld [vmem:[#allocation2 + $0xd0] sm:$0xff] }
  0xf6   : > { %3507 = vmatpush1.msk.msra.mxu0 %vm261_vm1, %v1299_v55  ;;  %v1468_v57 = vpop.permute.xlu1 %1467  ;;  %v1832_v55 = vld [vmem:[#allocation2 + $0xd8] sm:$0xff] }
  0xf8   : > { %v1466_v58 = vpop.permute.xlu0 %1465  ;;  %3508 = vmatmul.mubr.msk.f32.vlgmr.msra.gmra.mrb[0].mxu0 %vm257_vm2, %v3505_v56 }
  0xf9   : > { %v1473_v59 = vsel %vm1471_vm9, %v1466_v58, %v1468_v57  ;;  %3994 = vmatmul.mubr.msk.f32.vlgmr.msra.gmra.mrb[0].mxu1 %vm257_vm2, %v3505_v56  ;;  %1548 = vmatprep.mubr.f32.mxu0 %v5001_v0  ;;  %v4304_v56 = vpack.c.bf16 %v1814_v52, %v1813_v51  ;;  %v4378_v51 = vpack.c.bf16 %v2030_v43, %v2029_v42  ;;  %v2010_v42 = vld [vmem:[#allocation2 + $0x1f8] sm:$0xff]  ;;  %v2210_v43 = vld [vmem:[#allocation2 + $0x380] sm:$0xff] }
  0xfa   : > { %3512 = vmatprep.subr.msk.mxu0 %vm261_vm1, %v1473_v59  ;;  %v1470_v60 = vpop.permute.xlu1 %1469  ;;  %3998 = vmatprep.mubr.msk.f32.mxu1 %vm5002_vm0, %v5001_v0  ;;  %v1847_v59 = vld [vmem:[#allocation2 + $0x150] sm:$0xff] }
  0xfb   : > { %v1474_v61 = vsel %vm1471_vm9, %v1468_v57, %v1470_v60  ;;  %v4331_v57 = vpack.c.bf16 %v1846_v53, %v1845_v50  ;;  %v1815_v60 = vld [vmem:[#allocation2 + $0x50] sm:$0xff]  ;;  %v2016_v50 = vld [vmem:[#allocation2 + $0x228] sm:$0xff]  ;;  %v2031_v53 = vld [vmem:[#allocation2 + $0x2a0] sm:$0xff] }
  0xfc   : > { %v1464_v62 = vpop.permute.xlu0 %1463  ;;  %3997 = vmatpush3.msk.msra.mxu1 %vm261_vm1, %v1474_v61  ;;  %v1816_v61 = vld [vmem:[#allocation2 + $0x58] sm:$0xff] }
  0xfd   : > { %v1472_v63 = vsel %vm1471_vm9, %v1464_v62, %v1466_v58  ;;  %4001 = vmatprep.subr.mxu1 %v5001_v0  ;;  %v4306_v58 = vpack.c.bf16 %v1832_v55, %v1831_v54  ;;  %v1848_v62 = vld [vmem:[#allocation2 + $0x158] sm:$0xff]  ;;  %v2032_v54 = vld [vmem:[#allocation2 + $0x2a8] sm:$0xff] }
  0xfe   : > { %3513 = vmatpush1.msk.msra.mxu0 %vm261_vm1, %v1472_v63  ;;  %v1641_v2 = vpop.permute.xlu1 %1640  ;;  %v1833_v63 = vld [vmem:[#allocation2 + $0xe0] sm:$0xff] }
 0x100   : > { %v1639_v3 = vpop.permute.xlu0 %1638  ;;  %3514 = vmatmul.mubr.msk.f32.vlgmr.msra.gmra.mrb[0].mxu0 %vm257_vm2, %v3511_v1 }
 0x101   : > { %v1646_v6 = vsel %vm1644_vm10, %v1639_v3, %v1641_v2  ;;  %3999 = vmatmul.mubr.msk.f32.vlgmr.msra.gmra.mrb[0].mxu1 %vm257_vm2, %v3511_v1  ;;  %1721 = vmatprep.mubr.f32.mxu0 %v5001_v0  ;;  %v1834_v1 = vld [vmem:[#allocation2 + $0xe8] sm:$0xff] }
 0x102   : > { %3518 = vmatprep.subr.msk.mxu0 %vm261_vm1, %v1646_v6  ;;  %v1643_v7 = vpop.permute.xlu1 %1642  ;;  %4003 = vmatprep.mubr.msk.f32.mxu1 %vm5002_vm0, %v5001_v0  ;;  %v4310_v4 = vpack.c.bf16 %v1834_v1, %v1833_v63  ;;  %v1818_v6 = vld [vmem:[#allocation2 + $0x68] sm:$0xff]  ;;  %v2034_v63 = vld [vmem:[#allocation2 + $0x2b8] sm:$0xff] }
 0x103   : > { %v1647_v11 = vsel %vm1644_vm10, %v1641_v2, %v1643_v7  ;;  %v4308_v2 = vpack.c.bf16 %v1816_v61, %v1815_v60  ;;  %v1849_v7 = vld [vmem:[#allocation2 + $0x160] sm:$0xff]  ;;  %v4312_v9 = vpack.c.bf16 %v1818_v6, %v1817_v5  ;;  %v4381_v60 = vpack.c.bf16 %v2032_v54, %v2031_v53  ;;  %v2020_v5 = vld [vmem:[#allocation2 + $0x248] sm:$0xff]  ;;  %v2212_v53 = vld [vmem:[#allocation2 + $0x390] sm:$0xff] }
 0x104   : > { %v1637_v16 = vpop.permute.xlu0 %1636  ;;  %4002 = vmatpush3.msk.msra.mxu1 %vm261_vm1, %v1647_v11  ;;  %v4337_v10 = vpack.c.bf16 %v1850_v8, %v1849_v7  ;;  %v1835_v11 = vld [vmem:[#allocation2 + $0xf0] sm:$0xff]  ;;  %v2035_v8 = vld [vmem:[#allocation2 + $0x2c0] sm:$0xff]  ;;  %v2213_v54 = vld [vmem:[#allocation2 + $0x398] sm:$0xff] }
 0x105   : > { %v1645_v17 = vsel %vm1644_vm10, %v1637_v16, %v1639_v3  ;;  %4318 = vmatprep.subr.bf16.mxu1 %v5012_v19  ;;  %v4334_v3 = vpack.c.bf16 %v1848_v62, %v1847_v59  ;;  %v1819_v16 = vld [vmem:[#allocation2 + $0x70] sm:$0xff]  ;;  %v2018_v59 = vld [vmem:[#allocation2 + $0x238] sm:$0xff] }
 0x106   : > { %3519 = vmatpush1.msk.msra.mxu0 %vm261_vm1, %v1645_v17  ;;  %v1820_v17 = vld [vmem:[#allocation2 + $0x78] sm:$0xff]  ;;  %v2033_v62 = vld [vmem:[#allocation2 + $0x2b0] sm:$0xff] }
 0x107   : > { %4287 = vmatprep.subr.bf16.mxu0 %v4286_v12  ;;  %v1836_v12 = vld [vmem:[#allocation2 + $0xf8] sm:$0xff]  ;;  %v4384_v6 = vpack.c.bf16 %v2034_v63, %v2033_v62  ;;  %v2196_v62 = vld [vmem:[#allocation2 + $0x310] sm:$0xff] }
 0x108   : > { %3520 = vmatmul.mubr.msk.f32.vlgmr.msra.gmra.mrb[0].mxu0 %vm257_vm2, %v3517_v18  ;;  %v4314_v14 = vpack.c.bf16 %v1836_v12, %v1835_v11  ;;  %v2003_v11 = vld [vmem:[#allocation2 + $0x1c0] sm:$0xff]  ;;  %v2004_v12 = vld [vmem:[#allocation2 + $0x1c8] sm:$0xff]  ;;  %v2197_v63 = vld [vmem:[#allocation2 + $0x318] sm:$0xff] }
 0x109   : > { %4004 = vmatmul.mubr.msk.f32.vlgmr.msra.gmra.mrb[0].mxu1 %vm257_vm2, %v3517_v18  ;;  %4289 = vmatpush3.bf16.msra.mxu0 %v4288_v20  ;;  %v4340_v18 = vpack.c.bf16 %v1852_v15, %v1851_v13  ;;  %v4316_v20 = vpack.c.bf16 %v1820_v17, %v1819_v16  ;;  %v2021_v13 = vld [vmem:[#allocation2 + $0x250] sm:$0xff]  ;;  %v4360_v16 = vpack.c.bf16 %v2004_v12, %v2003_v11  ;;  %v2217_v12 = vld [vmem:[#allocation2 + $0x3b8] sm:$0xff] }
 0x10a   : > { %4320 = vmatpush3.bf16.msra.mxu1 %v4319_v21  ;;  %4291 = vmatprep.subr.bf16.mxu0 %v4290_v22  ;;  %v2011_v21 = vld [vmem:[#allocation2 + $0x200] sm:$0xff]  ;;  %v2012_v22 = vld [vmem:[#allocation2 + $0x208] sm:$0xff]  ;;  %v2037_v17 = vld [vmem:[#allocation2 + $0x2d0] sm:$0xff] }
 0x10b   : > { %4321 = vmatprep.subr.bf16.mxu1 %v5012_v19  ;;  %4038 = vmatprep.mubr.msk.f32.mxu1 %vm5002_vm0, %v5001_v0  ;;  %v4342_v23 = vpack.c.bf16 %v2012_v22, %v2011_v21  ;;  %v2005_v21 = vld [vmem:[#allocation2 + $0x1d0] sm:$0xff]  ;;  %v2006_v22 = vld [vmem:[#allocation2 + $0x1d8] sm:$0xff] }
 0x10c   : > { %v2216_v11 = vld [vmem:[#allocation2 + $0x3b0] sm:$0xff] }
 0x10d   : > { %4293 = vmatpush3.bf16.msra.mxu0 %v4292_v29 }
 0x10e   : > { %4323 = vmatpush3.bf16.msra.mxu1 %v4322_v30  ;;  %4295 = vmatprep.subr.bf16.mxu0 %v4294_v31  ;;  %v1995_v31 = vld [vmem:[#allocation2 + $0x180] sm:$0xff] }
 0x10f   : > { %4324 = vmatprep.subr.bf16.mxu1 %v5012_v19  ;;  %v4344_v41 = vpack.c.bf16 %v1996_v32, %v1995_v31  ;;  %v2008_v31 = vld [vmem:[#allocation2 + $0x1e8] sm:$0xff]  ;;  %v2025_v32 = vld [vmem:[#allocation2 + $0x270] sm:$0xff] }
 0x111   : > { %4297 = vmatpush3.bf16.msra.mxu0 %v4296_v38  ;;  %v4375_v38 = vpack.c.bf16 %v2028_v27, %v2027_v26  ;;  %v4364_v26 = vpack.c.bf16 %v2006_v22, %v2005_v21  ;;  %v2039_v27 = vld [vmem:[#allocation2 + $0x2e0] sm:$0xff]  ;;  %v2219_v22 = vld [vmem:[#allocation2 + $0x3c8] sm:$0xff] }
 0x112   : > { %4326 = vmatpush3.bf16.msra.mxu1 %v4325_v39  ;;  %4299 = vmatprep.subr.bf16.mxu0 %v4298_v40  ;;  %v2218_v21 = vld [vmem:[#allocation2 + $0x3c0] sm:$0xff] }
 0x113   : > { %4327 = vmatprep.subr.bf16.mxu1 %v5012_v19 }
 0x115   : > { %4301 = vmatpush3.bf16.msra.mxu0 %v4300_v47  ;;  %v412_v24 = vpop.permute.xlu0 %411  ;;  %v1998_v47 = vld [vmem:[#allocation2 + $0x198] sm:$0xff] }
 0x116   : > { %4329 = vmatpush3.bf16.msra.mxu1 %v4328_v48  ;;  %4303 = vmatprep.subr.bf16.mxu0 %v4302_v49  ;;  %v2015_v49 = vld [vmem:[#allocation2 + $0x220] sm:$0xff]  ;;  %v4348_v52 = vpack.c.bf16 %v1998_v47, %v1997_v46  ;;  %v4396_v46 = vpack.c.bf16 %v2042_v37, %v2041_v36  ;;  %v2204_v37 = vld [vmem:[#allocation2 + $0x350] sm:$0xff] }
 0x117   : > { %4330 = vmatprep.subr.bf16.mxu1 %v5012_v19  ;;  %v4350_v55 = vpack.c.bf16 %v2016_v50, %v2015_v49  ;;  %v2227_v49 = vld [vmem:[#allocation2 + $0x408] sm:$0xff] }
 0x119   : > { %4305 = vmatpush3.bf16.msra.mxu0 %v4304_v56  ;;  %v1999_v56 = vld [vmem:[#allocation2 + $0x1a0] sm:$0xff] }
 0x11a   : > { %4332 = vmatpush3.bf16.msra.mxu1 %v4331_v57  ;;  %4307 = vmatprep.subr.bf16.mxu0 %v4306_v58  ;;  %v2000_v57 = vld [vmem:[#allocation2 + $0x1a8] sm:$0xff]  ;;  %v2017_v58 = vld [vmem:[#allocation2 + $0x230] sm:$0xff] }
 0x11b   : > { %4333 = vmatprep.subr.bf16.mxu1 %v5012_v19  ;;  %v4352_v61 = vpack.c.bf16 %v2000_v57, %v1999_v56  ;;  %v4354_v1 = vpack.c.bf16 %v2018_v59, %v2017_v58  ;;  %v2228_v58 = vld [vmem:[#allocation2 + $0x410] sm:$0xff]  ;;  %v2229_v59 = vld [vmem:[#allocation2 + $0x418] sm:$0xff] }
 0x11d   : > { %4309 = vmatpush3.bf16.msra.mxu0 %v4308_v2  ;;  %v2001_v2 = vld [vmem:[#allocation2 + $0x1b0] sm:$0xff] }
 0x11e   : > { %4335 = vmatpush3.bf16.msra.mxu1 %v4334_v3  ;;  %4311 = vmatprep.subr.bf16.mxu0 %v4310_v4  ;;  %v2002_v3 = vld [vmem:[#allocation2 + $0x1b8] sm:$0xff]  ;;  %v2019_v4 = vld [vmem:[#allocation2 + $0x240] sm:$0xff] }
 0x11f   : > { %4336 = vmatprep.subr.bf16.mxu1 %v5012_v19  ;;  %v4356_v7 = vpack.c.bf16 %v2002_v3, %v2001_v2  ;;  %v2214_v2 = vld [vmem:[#allocation2 + $0x3a0] sm:$0xff]  ;;  %v2215_v3 = vld [vmem:[#allocation2 + $0x3a8] sm:$0xff] }
 0x121   : > { %4313 = vmatpush3.bf16.msra.mxu0 %v4312_v9  ;;  %v2036_v9 = vld [vmem:[#allocation2 + $0x2c8] sm:$0xff] }
 0x122   : > { %4338 = vmatpush3.bf16.msra.mxu1 %v4337_v10  ;;  %4315 = vmatprep.subr.bf16.mxu0 %v4314_v14  ;;  %v4358_v10 = vpack.c.bf16 %v2020_v5, %v2019_v4  ;;  %v2022_v14 = vld [vmem:[#allocation2 + $0x258] sm:$0xff]  ;;  %v4387_v15 = vpack.c.bf16 %v2036_v9, %v2035_v8  ;;  %v4434_v4 = vpack.c.bf16 %v2229_v59, %v2228_v58  ;;  %v2198_v9 = vld [vmem:[#allocation2 + $0x320] sm:$0xff]  ;;  %v2208_v58 = vld [vmem:[#allocation2 + $0x370] sm:$0xff] }
 0x123   : > { %4339 = vmatprep.subr.bf16.mxu1 %v5012_v19  ;;  %v4404_v5 = vpack.c.bf16 %v2197_v63, %v2196_v62  ;;  %v4406_v8 = vpack.c.bf16 %v2215_v3, %v2214_v2  ;;  %v2209_v59 = vld [vmem:[#allocation2 + $0x378] sm:$0xff]  ;;  %v2423_v2 = vld [vmem:[#allocation2 + $0x588] sm:$0xff] }
 0x124   : > { %v4428_v63 = vpack.c.bf16 %v2209_v59, %v2208_v58  ;;  %v2418_v58 = vld [vmem:[#allocation2 + $0x560] sm:$0xff]  ;;  %v2419_v59 = vld [vmem:[#allocation2 + $0x568] sm:$0xff] }
 0x125   : > { %4317 = vmatpush3.bf16.msra.mxu0 %v4316_v20  ;;  %v4362_v20 = vpack.c.bf16 %v2022_v14, %v2021_v13 }
 0x126   : > { %4341 = vmatpush3.bf16.msra.mxu1 %v4340_v18  ;;  %4343 = vmatprep.subr.bf16.mxu0 %v4342_v23  ;;  %v2038_v18 = vld [vmem:[#allocation2 + $0x2d8] sm:$0xff]  ;;  %v2023_v23 = vld [vmem:[#allocation2 + $0x260] sm:$0xff] }
 0x127   : > { %4374 = vmatprep.subr.bf16.mxu1 %v5012_v19 }
 0x1db   : > { %v1723_v25 = vpop.f32.mrb[0].mxu0 }
 0x1dc   : > { %v4734_v28 = vadd.f32 %v1723_v25, %v412_v24  ;;  %v1725_v29 = vpop.f32.mrb[1].mxu0  ;;  %v1794_v30 = vpop.f32.mrb[0].mxu1  ;;  %v4390_v25 = vpack.c.bf16 %v2038_v18, %v2037_v17  ;;  %v4410_v17 = vpack.c.bf16 %v2217_v12, %v2216_v11  ;;  %v2200_v18 = vld [vmem:[#allocation2 + $0x330] sm:$0xff]  ;;  %v2425_v12 = vld [vmem:[#allocation2 + $0x598] sm:$0xff] }
 0x1dd   : > { %v4735_v33 = vadd.f32 %v1725_v29, %v412_v24  ;;  %v4736_v34 = vadd.f32 %v1794_v30, %v412_v24  ;;  %v4005_v35 = vpop.f32.mrb[1].mxu1  ;;  %v2024_v24 = vld [vmem:[#allocation2 + $0x268] sm:$0xff]  ;;  %v2007_v30 = vld [vmem:[#allocation2 + $0x1e0] sm:$0xff]  ;;  %v2424_v11 = vld [vmem:[#allocation2 + $0x590] sm:$0xff] }
 0x1de   : > { %v5302_v44 = vmax.f32 %v4734_v28, 0.0  ;;  %v2040_v28 = vld [vmem:[#allocation2 + $0x2e8] sm:$0xff]  ;;  %v4366_v29 = vpack.c.bf16 %v2024_v24, %v2023_v23  ;;  %v4368_v35 = vpack.c.bf16 %v2008_v31, %v2007_v30  ;;  %v2220_v30 = vld [vmem:[#allocation2 + $0x3d0] sm:$0xff]  ;;  %v2221_v31 = vld [vmem:[#allocation2 + $0x3d8] sm:$0xff] }
 0x1df   : > { %v5298_v39 = vmax.f32 %v4735_v33, 0.0  ;;  %v5300_v40 = vmax.f32 %v4736_v34, 0.0  ;;  %v2026_v33 = vld [vmem:[#allocation2 + $0x278] sm:$0xff]  ;;  %v4393_v34 = vpack.c.bf16 %v2040_v28, %v2039_v27  ;;  %v4414_v27 = vpack.c.bf16 %v2219_v22, %v2218_v21  ;;  %v2202_v28 = vld [vmem:[#allocation2 + $0x340] sm:$0xff] }
 0x1e0   : > { %v4418_v36 = vpack.c.bf16 %v2221_v31, %v2220_v30  ;;  %v4490_v21 = vpack.c.bf16 %v2425_v12, %v2424_v11  ;;  %v2404_v11 = vld [vmem:[#allocation2 + $0x4f0] sm:$0xff]  ;;  %v2405_v12 = vld [vmem:[#allocation2 + $0x4f8] sm:$0xff] }
 0x1e1   : > { %1917 = vmatprep.mubr.f32.mxu0 %v5298_v39  ;;  %4039 = vmatmul.mubr.f32.vlgmr.msra.gmra.mrb[2].mxu1 %v5300_v40  ;;  %v2047_v48 = vrot.slane %v5298_v39, 1  ;;  %v2048_v56 = vrot.slane %v5300_v40, 1 }
 0x1e2   : > { %4376 = vmatpush3.bf16.msra.mxu1 %v4375_v38  ;;  %1918 = vmatmul.mubr.f32.vlgmr.msra.gmra.mrb[2].mxu0 %v5302_v44  ;;  %v4370_v38 = vpack.c.bf16 %v2026_v33, %v2025_v32 }
 0x1e3   : > { %4345 = vmatpush3.bf16.msra.mxu0 %v4344_v41  ;;  %2116 = vmatprep.mubr.f32.mxu0 %v2047_v48  ;;  %v2009_v41 = vld [vmem:[#allocation2 + $0x1f0] sm:$0xff]  ;;  %v2226_v48 = vld [vmem:[#allocation2 + $0x400] sm:$0xff] }
 0x1e4   : > { %4377 = vmatprep.subr.bf16.mxu1 %v5012_v19  ;;  %4347 = vmatprep.subr.bf16.mxu0 %v4346_v45  ;;  %v2211_v45 = vld [vmem:[#allocation2 + $0x388] sm:$0xff]  ;;  %v4372_v47 = vpack.c.bf16 %v2010_v42, %v2009_v41  ;;  %v2222_v41 = vld [vmem:[#allocation2 + $0x3e0] sm:$0xff] }
 0x1e5   : > { %4073 = vmatprep.mubr.msk.f32.mxu1 %vm5002_vm0, %v5001_v0  ;;  %v4398_v50 = vpack.c.bf16 %v2211_v45, %v2210_v43  ;;  %v2223_v42 = vld [vmem:[#allocation2 + $0x3e8] sm:$0xff] }
 0x1e6   : > { %4379 = vmatpush3.bf16.msra.mxu1 %v4378_v51  ;;  %v2194_v51 = vld [vmem:[#allocation2 + $0x300] sm:$0xff] }
 0x1e7   : > { %4349 = vmatpush3.bf16.msra.mxu0 %v4348_v52  ;;  %4380 = vmatprep.subr.bf16.mxu1 %v5012_v19  ;;  %v2195_v52 = vld [vmem:[#allocation2 + $0x308] sm:$0xff] }
 0x1e8   : > { %4351 = vmatprep.subr.bf16.mxu0 %v4350_v55  ;;  %v4431_v55 = vpack.c.bf16 %v2227_v49, %v2226_v48  ;;  %v4400_v57 = vpack.c.bf16 %v2195_v52, %v2194_v51  ;;  %v4422_v48 = vpack.c.bf16 %v2223_v42, %v2222_v41  ;;  %v2206_v49 = vld [vmem:[#allocation2 + $0x360] sm:$0xff]  ;;  %v2224_v51 = vld [vmem:[#allocation2 + $0x3f0] sm:$0xff]  ;;  %v2225_v52 = vld [vmem:[#allocation2 + $0x3f8] sm:$0xff] }
 0x1ea   : > { %4382 = vmatpush3.bf16.msra.mxu1 %v4381_v60  ;;  %v2046_v60 = vrot.slane %v5302_v44, 1 }
 0x1eb   : > { %4353 = vmatpush3.bf16.msra.mxu0 %v4352_v61  ;;  %4383 = vmatprep.subr.bf16.mxu1 %v5012_v19  ;;  %v4402_v61 = vpack.c.bf16 %v2213_v54, %v2212_v53 }
 0x1ec   : > { %4355 = vmatprep.subr.bf16.mxu0 %v4354_v1  ;;  %v2243_v1 = vrot.slane %v5298_v39, 2 }
 0x1ee   : > { %4385 = vmatpush3.bf16.msra.mxu1 %v4384_v6  ;;  %v2230_v6 = vld [vmem:[#allocation2 + $0x420] sm:$0xff] }
 0x1ef   : > { %4357 = vmatpush3.bf16.msra.mxu0 %v4356_v7  ;;  %4386 = vmatprep.subr.bf16.mxu1 %v5012_v19  ;;  %v2231_v7 = vld [vmem:[#allocation2 + $0x428] sm:$0xff] }
 0x1f0   : > { %4359 = vmatprep.subr.bf16.mxu0 %v4358_v10  ;;  %v2199_v10 = vld [vmem:[#allocation2 + $0x328] sm:$0xff]  ;;  %v4437_v13 = vpack.c.bf16 %v2231_v7, %v2230_v6  ;;  %v2408_v6 = vld [vmem:[#allocation2 + $0x510] sm:$0xff]  ;;  %v2409_v7 = vld [vmem:[#allocation2 + $0x518] sm:$0xff] }
 0x1f1   : > { %v4408_v14 = vpack.c.bf16 %v2199_v10, %v2198_v9  ;;  %v2244_v9 = vrot.slane %v5300_v40, 2 }
 0x1f2   : > { %4388 = vmatpush3.bf16.msra.mxu1 %v4387_v15  ;;  %v2232_v15 = vld [vmem:[#allocation2 + $0x430] sm:$0xff] }
 0x1f3   : > { %4361 = vmatpush3.bf16.msra.mxu0 %v4360_v16  ;;  %4389 = vmatprep.subr.bf16.mxu1 %v5012_v19  ;;  %v2233_v16 = vld [vmem:[#allocation2 + $0x438] sm:$0xff] }
 0x1f4   : > { %4363 = vmatprep.subr.bf16.mxu0 %v4362_v20  ;;  %v2201_v20 = vld [vmem:[#allocation2 + $0x338] sm:$0xff]  ;;  %v4440_v23 = vpack.c.bf16 %v2233_v16, %v2232_v15  ;;  %v2392_v15 = vld [vmem:[#allocation2 + $0x490] sm:$0xff] }
 0x1f5   : > { %v4412_v24 = vpack.c.bf16 %v2201_v20, %v2200_v18  ;;  %v2393_v16 = vld [vmem:[#allocation2 + $0x498] sm:$0xff]  ;;  %v2410_v18 = vld [vmem:[#allocation2 + $0x520] sm:$0xff]  ;;  %v2411_v20 = vld [vmem:[#allocation2 + $0x528] sm:$0xff] }
 0x1f6   : > { %4391 = vmatpush3.bf16.msra.mxu1 %v4390_v25  ;;  %v2234_v25 = vld [vmem:[#allocation2 + $0x440] sm:$0xff]  ;;  %v4460_v22 = vpack.c.bf16 %v2393_v16, %v2392_v15  ;;  %v4484_v16 = vpack.c.bf16 %v2405_v12, %v2404_v11  ;;  %v2615_v12 = vld [vmem:[#allocation2 + $0x6e8] sm:$0xff] }
 0x1f7   : > { %4365 = vmatpush3.bf16.msra.mxu0 %v4364_v26  ;;  %4392 = vmatprep.subr.bf16.mxu1 %v5012_v19  ;;  %v2235_v26 = vld [vmem:[#allocation2 + $0x448] sm:$0xff]  ;;  %v2614_v11 = vld [vmem:[#allocation2 + $0x6e0] sm:$0xff] }
 0x1f8   : > { %4367 = vmatprep.subr.bf16.mxu0 %v4366_v29  ;;  %v2203_v29 = vld [vmem:[#allocation2 + $0x348] sm:$0xff]  ;;  %v4443_v32 = vpack.c.bf16 %v2235_v26, %v2234_v25  ;;  %v4462_v25 = vpack.c.bf16 %v2411_v20, %v2410_v18  ;;  %v2394_v26 = vld [vmem:[#allocation2 + $0x4a0] sm:$0xff] }
 0x1f9   : > { %v4416_v33 = vpack.c.bf16 %v2203_v29, %v2202_v28  ;;  %v2412_v28 = vld [vmem:[#allocation2 + $0x530] sm:$0xff]  ;;  %v2413_v29 = vld [vmem:[#allocation2 + $0x538] sm:$0xff]  ;;  %v2619_v18 = vld [vmem:[#allocation2 + $0x708] sm:$0xff] }
 0x1fa   : > { %4394 = vmatpush3.bf16.msra.mxu1 %v4393_v34  ;;  %v2236_v34 = vld [vmem:[#allocation2 + $0x450] sm:$0xff] }
 0x1fb   : > { %4369 = vmatpush3.bf16.msra.mxu0 %v4368_v35  ;;  %4395 = vmatprep.subr.bf16.mxu1 %v5012_v19  ;;  %v2237_v35 = vld [vmem:[#allocation2 + $0x458] sm:$0xff] }
 0x1fc   : > { %4371 = vmatprep.subr.bf16.mxu0 %v4370_v38  ;;  %v2205_v38 = vld [vmem:[#allocation2 + $0x358] sm:$0xff]  ;;  %v4446_v43 = vpack.c.bf16 %v2237_v35, %v2236_v34  ;;  %v4466_v34 = vpack.c.bf16 %v2413_v29, %v2412_v28  ;;  %v2396_v35 = vld [vmem:[#allocation2 + $0x4b0] sm:$0xff] }
 0x1fd   : > { %v4420_v45 = vpack.c.bf16 %v2205_v38, %v2204_v37  ;;  %v2414_v37 = vld [vmem:[#allocation2 + $0x540] sm:$0xff]  ;;  %v2415_v38 = vld [vmem:[#allocation2 + $0x548] sm:$0xff]  ;;  %v2620_v28 = vld [vmem:[#allocation2 + $0x710] sm:$0xff] }
 0x1fe   : > { %4397 = vmatpush3.bf16.msra.mxu1 %v4396_v46  ;;  %v2238_v46 = vld [vmem:[#allocation2 + $0x460] sm:$0xff]  ;;  %v2621_v29 = vld [vmem:[#allocation2 + $0x718] sm:$0xff] }
 0x1ff   : > { %4373 = vmatpush3.bf16.msra.mxu0 %v4372_v47  ;;  %4430 = vmatprep.subr.bf16.mxu1 %v5012_v19  ;;  %v2239_v47 = vld [vmem:[#allocation2 + $0x468] sm:$0xff] }
 0x200   : > { %4399 = vmatprep.subr.bf16.mxu0 %v4398_v50  ;;  %v2207_v50 = vld [vmem:[#allocation2 + $0x368] sm:$0xff]  ;;  %v4449_v53 = vpack.c.bf16 %v2239_v47, %v2238_v46  ;;  %v4470_v46 = vpack.c.bf16 %v2415_v38, %v2414_v37  ;;  %v2398_v47 = vld [vmem:[#allocation2 + $0x4c0] sm:$0xff]  ;;  %v4546_v37 = vpack.c.bf16 %v2621_v29, %v2620_v28  ;;  %v2600_v28 = vld [vmem:[#allocation2 + $0x670] sm:$0xff] }
 0x201   : > { %4074 = vmatmul.mubr.f32.vlgmr.msra.gmra.mrb[2].mxu1 %v2048_v56  ;;  %v4424_v54 = vpack.c.bf16 %v2207_v50, %v2206_v49  ;;  %v2241_v56 = vld [vmem:[#allocation2 + $0x478] sm:$0xff]  ;;  %v2416_v49 = vld [vmem:[#allocation2 + $0x550] sm:$0xff] }
 0x202   : > { %2117 = vmatmul.mubr.f32.vlgmr.msra.gmra.mrb[4].mxu0 %v2046_v60  ;;  %4432 = vmatpush3.bf16.msra.mxu1 %v4431_v55  ;;  %v2240_v55 = vld [vmem:[#allocation2 + $0x470] sm:$0xff]  ;;  %v2406_v60 = vld [vmem:[#allocation2 + $0x500] sm:$0xff]  ;;  %v2417_v50 = vld [vmem:[#allocation2 + $0x558] sm:$0xff] }
 0x203   : > { %4401 = vmatpush3.bf16.msra.mxu0 %v4400_v57  ;;  %2312 = vmatprep.mubr.f32.mxu0 %v2243_v1  ;;  %v4426_v57 = vpack.c.bf16 %v2225_v52, %v2224_v51  ;;  %v4452_v62 = vpack.c.bf16 %v2241_v56, %v2240_v55  ;;  %v2422_v1 = vld [vmem:[#allocation2 + $0x580] sm:$0xff]  ;;  %v4474_v55 = vpack.c.bf16 %v2417_v50, %v2416_v49  ;;  %v2400_v56 = vld [vmem:[#allocation2 + $0x4d0] sm:$0xff]  ;;  %v2601_v29 = vld [vmem:[#allocation2 + $0x678] sm:$0xff] }
 0x204   : > { %4433 = vmatprep.subr.bf16.mxu1 %v5012_v19  ;;  %4403 = vmatprep.subr.bf16.mxu0 %v4402_v61  ;;  %v2407_v61 = vld [vmem:[#allocation2 + $0x508] sm:$0xff] }
 0x205   : > { %4108 = vmatprep.mubr.msk.f32.mxu1 %vm5002_vm0, %v5001_v0  ;;  %v4454_v3 = vpack.c.bf16 %v2407_v61, %v2406_v60 }
 0x206   : > { %4435 = vmatpush3.bf16.msra.mxu1 %v4434_v4  ;;  %v2390_v4 = vld [vmem:[#allocation2 + $0x480] sm:$0xff] }
 0x207   : > { %4405 = vmatpush3.bf16.msra.mxu0 %v4404_v5  ;;  %4436 = vmatprep.subr.bf16.mxu1 %v5012_v19  ;;  %v2391_v5 = vld [vmem:[#allocation2 + $0x488] sm:$0xff] }
 0x208   : > { %4407 = vmatprep.subr.bf16.mxu0 %v4406_v8  ;;  %v4487_v8 = vpack.c.bf16 %v2423_v2, %v2422_v1  ;;  %v4456_v10 = vpack.c.bf16 %v2391_v5, %v2390_v4  ;;  %v4478_v1 = vpack.c.bf16 %v2419_v59, %v2418_v58  ;;  %v2402_v2 = vld [vmem:[#allocation2 + $0x4e0] sm:$0xff]  ;;  %v2420_v4 = vld [vmem:[#allocation2 + $0x570] sm:$0xff]  ;;  %v2421_v5 = vld [vmem:[#allocation2 + $0x578] sm:$0xff] }
 0x20a   : > { %4438 = vmatpush3.bf16.msra.mxu1 %v4437_v13  ;;  %v2242_v13 = vrot.slane %v5302_v44, 2 }
 0x20b   : > { %4409 = vmatpush3.bf16.msra.mxu0 %v4408_v14  ;;  %4439 = vmatprep.subr.bf16.mxu1 %v5012_v19  ;;  %v4458_v14 = vpack.c.bf16 %v2409_v7, %v2408_v6 }
 0x20c   : > { %4411 = vmatprep.subr.bf16.mxu0 %v4410_v17  ;;  %v2439_v17 = vrot.slane %v5298_v39, 3 }
 0x20e   : > { %4441 = vmatpush3.bf16.msra.mxu1 %v4440_v23  ;;  %v2426_v23 = vld [vmem:[#allocation2 + $0x5a0] sm:$0xff] }
 0x20f   : > { %4413 = vmatpush3.bf16.msra.mxu0 %v4412_v24  ;;  %4442 = vmatprep.subr.bf16.mxu1 %v5012_v19  ;;  %v2427_v24 = vld [vmem:[#allocation2 + $0x5a8] sm:$0xff] }
 0x210   : > { %4415 = vmatprep.subr.bf16.mxu0 %v4414_v27  ;;  %v2395_v27 = vld [vmem:[#allocation2 + $0x4a8] sm:$0xff]  ;;  %v4493_v30 = vpack.c.bf16 %v2427_v24, %v2426_v23  ;;  %v2604_v23 = vld [vmem:[#allocation2 + $0x690] sm:$0xff]  ;;  %v2605_v24 = vld [vmem:[#allocation2 + $0x698] sm:$0xff] }
 0x211   : > { %v4464_v31 = vpack.c.bf16 %v2395_v27, %v2394_v26  ;;  %v2440_v26 = vrot.slane %v5300_v40, 3 }
 0x212   : > { %4444 = vmatpush3.bf16.msra.mxu1 %v4443_v32  ;;  %v2428_v32 = vld [vmem:[#allocation2 + $0x5b0] sm:$0xff] }
 0x213   : > { %4417 = vmatpush3.bf16.msra.mxu0 %v4416_v33  ;;  %4445 = vmatprep.subr.bf16.mxu1 %v5012_v19  ;;  %v2429_v33 = vld [vmem:[#allocation2 + $0x5b8] sm:$0xff] }
 0x214   : > { %4419 = vmatprep.subr.bf16.mxu0 %v4418_v36  ;;  %v2397_v36 = vld [vmem:[#allocation2 + $0x4b8] sm:$0xff]  ;;  %v4496_v41 = vpack.c.bf16 %v2429_v33, %v2428_v32  ;;  %v2588_v32 = vld [vmem:[#allocation2 + $0x610] sm:$0xff] }
 0x215   : > { %v4468_v42 = vpack.c.bf16 %v2397_v36, %v2396_v35  ;;  %v2589_v33 = vld [vmem:[#allocation2 + $0x618] sm:$0xff]  ;;  %v2606_v35 = vld [vmem:[#allocation2 + $0x6a0] sm:$0xff]  ;;  %v2607_v36 = vld [vmem:[#allocation2 + $0x6a8] sm:$0xff] }
 0x216   : > { %4447 = vmatpush3.bf16.msra.mxu1 %v4446_v43  ;;  %v2430_v43 = vld [vmem:[#allocation2 + $0x5c0] sm:$0xff]  ;;  %v4516_v38 = vpack.c.bf16 %v2589_v33, %v2588_v32  ;;  %v4540_v33 = vpack.c.bf16 %v2601_v29, %v2600_v28  ;;  %v2811_v29 = vld [vmem:[#allocation2 + $0x868] sm:$0xff] }
 0x217   : > { %4421 = vmatpush3.bf16.msra.mxu0 %v4420_v45  ;;  %4448 = vmatprep.subr.bf16.mxu1 %v5012_v19  ;;  %v2431_v45 = vld [vmem:[#allocation2 + $0x5c8] sm:$0xff]  ;;  %v2810_v28 = vld [vmem:[#allocation2 + $0x860] sm:$0xff] }
 0x218   : > { %4423 = vmatprep.subr.bf16.mxu0 %v4422_v48  ;;  %v2399_v48 = vld [vmem:[#allocation2 + $0x4c8] sm:$0xff]  ;;  %v4499_v51 = vpack.c.bf16 %v2431_v45, %v2430_v43  ;;  %v4518_v43 = vpack.c.bf16 %v2607_v36, %v2606_v35  ;;  %v2590_v45 = vld [vmem:[#allocation2 + $0x620] sm:$0xff] }
 0x219   : > { %v4472_v52 = vpack.c.bf16 %v2399_v48, %v2398_v47  ;;  %v2608_v47 = vld [vmem:[#allocation2 + $0x6b0] sm:$0xff]  ;;  %v2609_v48 = vld [vmem:[#allocation2 + $0x6b8] sm:$0xff]  ;;  %v2815_v35 = vld [vmem:[#allocation2 + $0x888] sm:$0xff] }
 0x21a   : > { %4450 = vmatpush3.bf16.msra.mxu1 %v4449_v53  ;;  %v2432_v53 = vld [vmem:[#allocation2 + $0x5d0] sm:$0xff] }
 0x21b   : > { %4425 = vmatpush3.bf16.msra.mxu0 %v4424_v54  ;;  %4451 = vmatprep.subr.bf16.mxu1 %v5012_v19  ;;  %v2433_v54 = vld [vmem:[#allocation2 + $0x5d8] sm:$0xff] }
 0x21c   : > { %4427 = vmatprep.subr.bf16.mxu0 %v4426_v57  ;;  %v2401_v57 = vld [vmem:[#allocation2 + $0x4d8] sm:$0xff]  ;;  %v4502_v60 = vpack.c.bf16 %v2433_v54, %v2432_v53  ;;  %v4522_v53 = vpack.c.bf16 %v2609_v48, %v2608_v47  ;;  %v2592_v54 = vld [vmem:[#allocation2 + $0x630] sm:$0xff] }
 0x21d   : > { %v4476_v61 = vpack.c.bf16 %v2401_v57, %v2400_v56  ;;  %v2610_v56 = vld [vmem:[#allocation2 + $0x6c0] sm:$0xff]  ;;  %v2611_v57 = vld [vmem:[#allocation2 + $0x6c8] sm:$0xff]  ;;  %v2816_v47 = vld [vmem:[#allocation2 + $0x890] sm:$0xff] }
 0x21e   : > { %4453 = vmatpush3.bf16.msra.mxu1 %v4452_v62  ;;  %v2434_v62 = vld [vmem:[#allocation2 + $0x5e0] sm:$0xff]  ;;  %v2817_v48 = vld [vmem:[#allocation2 + $0x898] sm:$0xff] }
 0x21f   : > { %4429 = vmatpush3.bf16.msra.mxu0 %v4428_v63  ;;  %4486 = vmatprep.subr.bf16.mxu1 %v5012_v19  ;;  %v2435_v63 = vld [vmem:[#allocation2 + $0x5e8] sm:$0xff] }
 0x220   : > { %4455 = vmatprep.subr.bf16.mxu0 %v4454_v3  ;;  %v2403_v3 = vld [vmem:[#allocation2 + $0x4e8] sm:$0xff]  ;;  %v4505_v6 = vpack.c.bf16 %v2435_v63, %v2434_v62  ;;  %v4526_v62 = vpack.c.bf16 %v2611_v57, %v2610_v56  ;;  %v2594_v63 = vld [vmem:[#allocation2 + $0x640] sm:$0xff]  ;;  %v4602_v56 = vpack.c.bf16 %v2817_v48, %v2816_v47  ;;  %v2796_v47 = vld [vmem:[#allocation2 + $0x7f0] sm:$0xff] }
 0x221   : > { %4109 = vmatmul.mubr.f32.vlgmr.msra.gmra.mrb[2].mxu1 %v2244_v9  ;;  %v4480_v7 = vpack.c.bf16 %v2403_v3, %v2402_v2  ;;  %v2437_v9 = vld [vmem:[#allocation2 + $0x5f8] sm:$0xff]  ;;  %v2612_v2 = vld [vmem:[#allocation2 + $0x6d0] sm:$0xff] }
 0x222   : > { %2313 = vmatmul.mubr.f32.vlgmr.msra.gmra.mrb[6].mxu0 %v2242_v13  ;;  %4488 = vmatpush3.bf16.msra.mxu1 %v4487_v8  ;;  %v2436_v8 = vld [vmem:[#allocation2 + $0x5f0] sm:$0xff]  ;;  %v2602_v13 = vld [vmem:[#allocation2 + $0x680] sm:$0xff]  ;;  %v2613_v3 = vld [vmem:[#allocation2 + $0x6d8] sm:$0xff] }
 0x223   : > { %4457 = vmatpush3.bf16.msra.mxu0 %v4456_v10  ;;  %2508 = vmatprep.mubr.f32.mxu0 %v2439_v17  ;;  %v4482_v10 = vpack.c.bf16 %v2421_v5, %v2420_v4  ;;  %v4508_v15 = vpack.c.bf16 %v2437_v9, %v2436_v8  ;;  %v2618_v17 = vld [vmem:[#allocation2 + $0x700] sm:$0xff]  ;;  %v4530_v8 = vpack.c.bf16 %v2613_v3, %v2612_v2  ;;  %v2596_v9 = vld [vmem:[#allocation2 + $0x650] sm:$0xff]  ;;  %v2797_v48 = vld [vmem:[#allocation2 + $0x7f8] sm:$0xff] }
 0x224   : > { %4489 = vmatprep.subr.bf16.mxu1 %v5012_v19  ;;  %4459 = vmatprep.subr.bf16.mxu0 %v4458_v14  ;;  %v2603_v14 = vld [vmem:[#allocation2 + $0x688] sm:$0xff] }
 0x225   : > { %4143 = vmatprep.mubr.msk.f32.mxu1 %vm5002_vm0, %v5001_v0  ;;  %v4510_v20 = vpack.c.bf16 %v2603_v14, %v2602_v13 }
 0x226   : > { %4491 = vmatpush3.bf16.msra.mxu1 %v4490_v21  ;;  %v2586_v21 = vld [vmem:[#allocation2 + $0x600] sm:$0xff] }
 0x227   : > { %4461 = vmatpush3.bf16.msra.mxu0 %v4460_v22  ;;  %4492 = vmatprep.subr.bf16.mxu1 %v5012_v19  ;;  %v2587_v22 = vld [vmem:[#allocation2 + $0x608] sm:$0xff] }
 0x228   : > { %4463 = vmatprep.subr.bf16.mxu0 %v4462_v25  ;;  %v4543_v25 = vpack.c.bf16 %v2619_v18, %v2618_v17  ;;  %v4512_v27 = vpack.c.bf16 %v2587_v22, %v2586_v21  ;;  %v4534_v17 = vpack.c.bf16 %v2615_v12, %v2614_v11  ;;  %v2598_v18 = vld [vmem:[#allocation2 + $0x660] sm:$0xff]  ;;  %v2616_v21 = vld [vmem:[#allocation2 + $0x6f0] sm:$0xff]  ;;  %v2617_v22 = vld [vmem:[#allocation2 + $0x6f8] sm:$0xff] }
 0x22a   : > { %4494 = vmatpush3.bf16.msra.mxu1 %v4493_v30  ;;  %v2438_v30 = vrot.slane %v5302_v44, 3 }
 0x22b   : > { %4465 = vmatpush3.bf16.msra.mxu0 %v4464_v31  ;;  %4495 = vmatprep.subr.bf16.mxu1 %v5012_v19  ;;  %v4514_v31 = vpack.c.bf16 %v2605_v24, %v2604_v23 }
 0x22c   : > { %4467 = vmatprep.subr.bf16.mxu0 %v4466_v34  ;;  %v2635_v34 = vrot.slane %v5298_v39, 4 }
 0x22e   : > { %4497 = vmatpush3.bf16.msra.mxu1 %v4496_v41  ;;  %v2622_v41 = vld [vmem:[#allocation2 + $0x720] sm:$0xff] }
 0x22f   : > { %4469 = vmatpush3.bf16.msra.mxu0 %v4468_v42  ;;  %4498 = vmatprep.subr.bf16.mxu1 %v5012_v19  ;;  %v2623_v42 = vld [vmem:[#allocation2 + $0x728] sm:$0xff] }
 0x230   : > { %4471 = vmatprep.subr.bf16.mxu0 %v4470_v46  ;;  %v2591_v46 = vld [vmem:[#allocation2 + $0x628] sm:$0xff]  ;;  %v4549_v49 = vpack.c.bf16 %v2623_v42, %v2622_v41  ;;  %v2800_v41 = vld [vmem:[#allocation2 + $0x810] sm:$0xff]  ;;  %v2801_v42 = vld [vmem:[#allocation2 + $0x818] sm:$0xff] }
 0x231   : > { %v4520_v50 = vpack.c.bf16 %v2591_v46, %v2590_v45  ;;  %v2636_v45 = vrot.slane %v5300_v40, 4 }
 0x232   : > { %4500 = vmatpush3.bf16.msra.mxu1 %v4499_v51  ;;  %v2624_v51 = vld [vmem:[#allocation2 + $0x730] sm:$0xff] }
 0x233   : > { %4473 = vmatpush3.bf16.msra.mxu0 %v4472_v52  ;;  %4501 = vmatprep.subr.bf16.mxu1 %v5012_v19  ;;  %v2625_v52 = vld [vmem:[#allocation2 + $0x738] sm:$0xff] }
 0x234   : > { %4475 = vmatprep.subr.bf16.mxu0 %v4474_v55  ;;  %v2593_v55 = vld [vmem:[#allocation2 + $0x638] sm:$0xff]  ;;  %v4552_v58 = vpack.c.bf16 %v2625_v52, %v2624_v51  ;;  %v2784_v51 = vld [vmem:[#allocation2 + $0x790] sm:$0xff] }
 0x235   : > { %v4524_v59 = vpack.c.bf16 %v2593_v55, %v2592_v54  ;;  %v2785_v52 = vld [vmem:[#allocation2 + $0x798] sm:$0xff]  ;;  %v2802_v54 = vld [vmem:[#allocation2 + $0x820] sm:$0xff]  ;;  %v2803_v55 = vld [vmem:[#allocation2 + $0x828] sm:$0xff] }
 0x236   : > { %4503 = vmatpush3.bf16.msra.mxu1 %v4502_v60  ;;  %v2626_v60 = vld [vmem:[#allocation2 + $0x740] sm:$0xff]  ;;  %v4572_v57 = vpack.c.bf16 %v2785_v52, %v2784_v51  ;;  %v4596_v52 = vpack.c.bf16 %v2797_v48, %v2796_v47  ;;  %v3007_v48 = vld [vmem:[#allocation2 + $0x9e8] sm:$0xff] }
 0x237   : > { %4477 = vmatpush3.bf16.msra.mxu0 %v4476_v61  ;;  %4504 = vmatprep.subr.bf16.mxu1 %v5012_v19  ;;  %v2627_v61 = vld [vmem:[#allocation2 + $0x748] sm:$0xff]  ;;  %v3006_v47 = vld [vmem:[#allocation2 + $0x9e0] sm:$0xff] }
 0x238   : > { %4479 = vmatprep.subr.bf16.mxu0 %v4478_v1  ;;  %v2595_v1 = vld [vmem:[#allocation2 + $0x648] sm:$0xff]  ;;  %v4555_v4 = vpack.c.bf16 %v2627_v61, %v2626_v60  ;;  %v4574_v60 = vpack.c.bf16 %v2803_v55, %v2802_v54  ;;  %v2786_v61 = vld [vmem:[#allocation2 + $0x7a0] sm:$0xff] }
 0x239   : > { %v4528_v5 = vpack.c.bf16 %v2595_v1, %v2594_v63  ;;  %v2804_v63 = vld [vmem:[#allocation2 + $0x830] sm:$0xff]  ;;  %v2805_v1 = vld [vmem:[#allocation2 + $0x838] sm:$0xff]  ;;  %v3011_v54 = vld [vmem:[#allocation2 + $0xa08] sm:$0xff] }
 0x23a   : > { %4506 = vmatpush3.bf16.msra.mxu1 %v4505_v6  ;;  %v2628_v6 = vld [vmem:[#allocation2 + $0x750] sm:$0xff] }
 0x23b   : > { %4481 = vmatpush3.bf16.msra.mxu0 %v4480_v7  ;;  %4507 = vmatprep.subr.bf16.mxu1 %v5012_v19  ;;  %v2629_v7 = vld [vmem:[#allocation2 + $0x758] sm:$0xff] }
 0x23c   : > { %4483 = vmatprep.subr.bf16.mxu0 %v4482_v10  ;;  %v2597_v10 = vld [vmem:[#allocation2 + $0x658] sm:$0xff]  ;;  %v4558_v13 = vpack.c.bf16 %v2629_v7, %v2628_v6  ;;  %v4578_v6 = vpack.c.bf16 %v2805_v1, %v2804_v63  ;;  %v2788_v7 = vld [vmem:[#allocation2 + $0x7b0] sm:$0xff] }
 0x23d   : > { %v4532_v14 = vpack.c.bf16 %v2597_v10, %v2596_v9  ;;  %v2806_v9 = vld [vmem:[#allocation2 + $0x840] sm:$0xff]  ;;  %v2807_v10 = vld [vmem:[#allocation2 + $0x848] sm:$0xff]  ;;  %v3012_v63 = vld [vmem:[#allocation2 + $0xa10] sm:$0xff] }
 0x23e   : > { %4509 = vmatpush3.bf16.msra.mxu1 %v4508_v15  ;;  %v2630_v15 = vld [vmem:[#allocation2 + $0x760] sm:$0xff]  ;;  %v3013_v1 = vld [vmem:[#allocation2 + $0xa18] sm:$0xff] }
 0x23f   : > { %4485 = vmatpush3.bf16.msra.mxu0 %v4484_v16  ;;  %4542 = vmatprep.subr.bf16.mxu1 %v5012_v19  ;;  %v2631_v16 = vld [vmem:[#allocation2 + $0x768] sm:$0xff] }
 0x240   : > { %4511 = vmatprep.subr.bf16.mxu0 %v4510_v20  ;;  %v2599_v20 = vld [vmem:[#allocation2 + $0x668] sm:$0xff]  ;;  %v4561_v23 = vpack.c.bf16 %v2631_v16, %v2630_v15  ;;  %v4582_v15 = vpack.c.bf16 %v2807_v10, %v2806_v9  ;;  %v2790_v16 = vld [vmem:[#allocation2 + $0x7c0] sm:$0xff]  ;;  %v4658_v9 = vpack.c.bf16 %v3013_v1, %v3012_v63  ;;  %v2992_v63 = vld [vmem:[#allocation2 + $0x970] sm:$0xff] }
 0x241   : > { %4144 = vmatmul.mubr.f32.vlgmr.msra.gmra.mrb[2].mxu1 %v2440_v26  ;;  %v4536_v24 = vpack.c.bf16 %v2599_v20, %v2598_v18  ;;  %v2633_v26 = vld [vmem:[#allocation2 + $0x778] sm:$0xff]  ;;  %v2808_v18 = vld [vmem:[#allocation2 + $0x850] sm:$0xff] }
 0x242   : > { %2509 = vmatmul.mubr.f32.vlgmr.msra.gmra.mrb[8].mxu0 %v2438_v30  ;;  %4544 = vmatpush3.bf16.msra.mxu1 %v4543_v25  ;;  %v2632_v25 = vld [vmem:[#allocation2 + $0x770] sm:$0xff]  ;;  %v2798_v30 = vld [vmem:[#allocation2 + $0x800] sm:$0xff]  ;;  %v2809_v20 = vld [vmem:[#allocation2 + $0x858] sm:$0xff] }
 0x243   : > { %4513 = vmatpush3.bf16.msra.mxu0 %v4512_v27  ;;  %2704 = vmatprep.mubr.f32.mxu0 %v2635_v34  ;;  %v4538_v27 = vpack.c.bf16 %v2617_v22, %v2616_v21  ;;  %v4564_v32 = vpack.c.bf16 %v2633_v26, %v2632_v25  ;;  %v2814_v34 = vld [vmem:[#allocation2 + $0x880] sm:$0xff]  ;;  %v4586_v25 = vpack.c.bf16 %v2809_v20, %v2808_v18  ;;  %v2792_v26 = vld [vmem:[#allocation2 + $0x7d0] sm:$0xff]  ;;  %v2993_v1 = vld [vmem:[#allocation2 + $0x978] sm:$0xff] }
 0x244   : > { %4545 = vmatprep.subr.bf16.mxu1 %v5012_v19  ;;  %4515 = vmatprep.subr.bf16.mxu0 %v4514_v31  ;;  %v2799_v31 = vld [vmem:[#allocation2 + $0x808] sm:$0xff] }
 0x245   : > { %4178 = vmatprep.mubr.msk.f32.mxu1 %vm5002_vm0, %v5001_v0  ;;  %v4566_v36 = vpack.c.bf16 %v2799_v31, %v2798_v30 }
 0x246   : > { %4547 = vmatpush3.bf16.msra.mxu1 %v4546_v37  ;;  %v2782_v37 = vld [vmem:[#allocation2 + $0x780] sm:$0xff] }
 0x247   : > { %4517 = vmatpush3.bf16.msra.mxu0 %v4516_v38  ;;  %4548 = vmatprep.subr.bf16.mxu1 %v5012_v19  ;;  %v2783_v38 = vld [vmem:[#allocation2 + $0x788] sm:$0xff] }
 0x248   : > { %4519 = vmatprep.subr.bf16.mxu0 %v4518_v43  ;;  %v4599_v43 = vpack.c.bf16 %v2815_v35, %v2814_v34  ;;  %v4568_v46 = vpack.c.bf16 %v2783_v38, %v2782_v37  ;;  %v4590_v34 = vpack.c.bf16 %v2811_v29, %v2810_v28  ;;  %v2794_v35 = vld [vmem:[#allocation2 + $0x7e0] sm:$0xff]  ;;  %v2812_v37 = vld [vmem:[#allocation2 + $0x870] sm:$0xff]  ;;  %v2813_v38 = vld [vmem:[#allocation2 + $0x878] sm:$0xff] }
 0x24a   : > { %4550 = vmatpush3.bf16.msra.mxu1 %v4549_v49  ;;  %v2634_v49 = vrot.slane %v5302_v44, 4 }
 0x24b   : > { %4521 = vmatpush3.bf16.msra.mxu0 %v4520_v50  ;;  %4551 = vmatprep.subr.bf16.mxu1 %v5012_v19  ;;  %v4570_v50 = vpack.c.bf16 %v2801_v42, %v2800_v41 }
 0x24c   : > { %4523 = vmatprep.subr.bf16.mxu0 %v4522_v53  ;;  %v2831_v53 = vrot.slane %v5298_v39, 5 }
 0x24e   : > { %4553 = vmatpush3.bf16.msra.mxu1 %v4552_v58  ;;  %v2818_v58 = vld [vmem:[#allocation2 + $0x8a0] sm:$0xff] }
 0x24f   : > { %4525 = vmatpush3.bf16.msra.mxu0 %v4524_v59  ;;  %4554 = vmatprep.subr.bf16.mxu1 %v5012_v19  ;;  %v2819_v59 = vld [vmem:[#allocation2 + $0x8a8] sm:$0xff] }
 0x250   : > { %4527 = vmatprep.subr.bf16.mxu0 %v4526_v62  ;;  %v2787_v62 = vld [vmem:[#allocation2 + $0x7a8] sm:$0xff]  ;;  %v4605_v2 = vpack.c.bf16 %v2819_v59, %v2818_v58  ;;  %v2996_v58 = vld [vmem:[#allocation2 + $0x990] sm:$0xff]  ;;  %v2997_v59 = vld [vmem:[#allocation2 + $0x998] sm:$0xff] }
 0x251   : > { %v4576_v3 = vpack.c.bf16 %v2787_v62, %v2786_v61  ;;  %v2832_v61 = vrot.slane %v5300_v40, 5 }
 0x252   : > { %4556 = vmatpush3.bf16.msra.mxu1 %v4555_v4  ;;  %v2820_v4 = vld [vmem:[#allocation2 + $0x8b0] sm:$0xff] }
 0x253   : > { %4529 = vmatpush3.bf16.msra.mxu0 %v4528_v5  ;;  %4557 = vmatprep.subr.bf16.mxu1 %v5012_v19  ;;  %v2821_v5 = vld [vmem:[#allocation2 + $0x8b8] sm:$0xff] }
 0x254   : > { %4531 = vmatprep.subr.bf16.mxu0 %v4530_v8  ;;  %v2789_v8 = vld [vmem:[#allocation2 + $0x7b8] sm:$0xff]  ;;  %v4608_v11 = vpack.c.bf16 %v2821_v5, %v2820_v4  ;;  %v2980_v4 = vld [vmem:[#allocation2 + $0x910] sm:$0xff] }
 0x255   : > { %v4580_v12 = vpack.c.bf16 %v2789_v8, %v2788_v7  ;;  %v2981_v5 = vld [vmem:[#allocation2 + $0x918] sm:$0xff]  ;;  %v2998_v7 = vld [vmem:[#allocation2 + $0x9a0] sm:$0xff]  ;;  %v2999_v8 = vld [vmem:[#allocation2 + $0x9a8] sm:$0xff] }
 0x256   : > { %4559 = vmatpush3.bf16.msra.mxu1 %v4558_v13  ;;  %v2822_v13 = vld [vmem:[#allocation2 + $0x8c0] sm:$0xff]  ;;  %v4628_v10 = vpack.c.bf16 %v2981_v5, %v2980_v4  ;;  %v4652_v5 = vpack.c.bf16 %v2993_v1, %v2992_v63 }
 0x257   : > { %4533 = vmatpush3.bf16.msra.mxu0 %v4532_v14  ;;  %4560 = vmatprep.subr.bf16.mxu1 %v5012_v19  ;;  %v2823_v14 = vld [vmem:[#allocation2 + $0x8c8] sm:$0xff] }
 0x258   : > { %4535 = vmatprep.subr.bf16.mxu0 %v4534_v17  ;;  %v2791_v17 = vld [vmem:[#allocation2 + $0x7c8] sm:$0xff]  ;;  %v4611_v21 = vpack.c.bf16 %v2823_v14, %v2822_v13  ;;  %v4630_v13 = vpack.c.bf16 %v2999_v8, %v2998_v7  ;;  %v2982_v14 = vld [vmem:[#allocation2 + $0x920] sm:$0xff] }
 0x259   : > { %v4584_v22 = vpack.c.bf16 %v2791_v17, %v2790_v16  ;;  %v3000_v16 = vld [vmem:[#allocation2 + $0x9b0] sm:$0xff]  ;;  %v3001_v17 = vld [vmem:[#allocation2 + $0x9b8] sm:$0xff]  ;;  %v3207_v7 = vld [vmem:[#allocation2 + $0xb88] sm:$0xff] }
 0x25a   : > { %4562 = vmatpush3.bf16.msra.mxu1 %v4561_v23  ;;  %v2824_v23 = vld [vmem:[#allocation2 + $0x8d0] sm:$0xff] }
 0x25b   : > { %4537 = vmatpush3.bf16.msra.mxu0 %v4536_v24  ;;  %4563 = vmatprep.subr.bf16.mxu1 %v5012_v19  ;;  %v2825_v24 = vld [vmem:[#allocation2 + $0x8d8] sm:$0xff] }
 0x25c   : > { %4539 = vmatprep.subr.bf16.mxu0 %v4538_v27  ;;  %v2793_v27 = vld [vmem:[#allocation2 + $0x7d8] sm:$0xff]  ;;  %v4614_v30 = vpack.c.bf16 %v2825_v24, %v2824_v23  ;;  %v4634_v23 = vpack.c.bf16 %v3001_v17, %v3000_v16  ;;  %v2984_v24 = vld [vmem:[#allocation2 + $0x930] sm:$0xff] }
 0x25d   : > { %v4588_v31 = vpack.c.bf16 %v2793_v27, %v2792_v26  ;;  %v3002_v26 = vld [vmem:[#allocation2 + $0x9c0] sm:$0xff]  ;;  %v3003_v27 = vld [vmem:[#allocation2 + $0x9c8] sm:$0xff]  ;;  %v3208_v16 = vld [vmem:[#allocation2 + $0xb90] sm:$0xff] }
 0x25e   : > { %4565 = vmatpush3.bf16.msra.mxu1 %v4564_v32  ;;  %v2826_v32 = vld [vmem:[#allocation2 + $0x8e0] sm:$0xff]  ;;  %v3209_v17 = vld [vmem:[#allocation2 + $0xb98] sm:$0xff] }
 0x25f   : > { %4541 = vmatpush3.bf16.msra.mxu0 %v4540_v33  ;;  %4598 = vmatprep.subr.bf16.mxu1 %v5012_v19  ;;  %v2827_v33 = vld [vmem:[#allocation2 + $0x8e8] sm:$0xff] }
 0x260   : > { %4567 = vmatprep.subr.bf16.mxu0 %v4566_v36  ;;  %v2795_v36 = vld [vmem:[#allocation2 + $0x7e8] sm:$0xff]  ;;  %v4617_v41 = vpack.c.bf16 %v2827_v33, %v2826_v32  ;;  %v4638_v32 = vpack.c.bf16 %v3003_v27, %v3002_v26  ;;  %v2986_v33 = vld [vmem:[#allocation2 + $0x940] sm:$0xff]  ;;  %v4714_v26 = vpack.c.bf16 %v3209_v17, %v3208_v16  ;;  %v3188_v17 = vld [vmem:[#allocation2 + $0xaf0] sm:$0xff] }
 0x261   : > { %4179 = vmatmul.mubr.f32.vlgmr.msra.gmra.mrb[2].mxu1 %v2636_v45  ;;  %v4592_v42 = vpack.c.bf16 %v2795_v36, %v2794_v35  ;;  %v2829_v45 = vld [vmem:[#allocation2 + $0x8f8] sm:$0xff]  ;;  %v3004_v35 = vld [vmem:[#allocation2 + $0x9d0] sm:$0xff] }
 0x262   : > { %2705 = vmatmul.mubr.f32.vlgmr.msra.gmra.mrb[10].mxu0 %v2634_v49  ;;  %4600 = vmatpush3.bf16.msra.mxu1 %v4599_v43  ;;  %v2828_v43 = vld [vmem:[#allocation2 + $0x8f0] sm:$0xff]  ;;  %v2994_v49 = vld [vmem:[#allocation2 + $0x980] sm:$0xff]  ;;  %v3005_v36 = vld [vmem:[#allocation2 + $0x9d8] sm:$0xff] }
 0x263   : > { %4569 = vmatpush3.bf16.msra.mxu0 %v4568_v46  ;;  %2900 = vmatprep.mubr.f32.mxu0 %v2831_v53  ;;  %v4594_v46 = vpack.c.bf16 %v2813_v38, %v2812_v37  ;;  %v4620_v51 = vpack.c.bf16 %v2829_v45, %v2828_v43  ;;  %v3010_v53 = vld [vmem:[#allocation2 + $0xa00] sm:$0xff]  ;;  %v4642_v43 = vpack.c.bf16 %v3005_v36, %v3004_v35  ;;  %v2988_v45 = vld [vmem:[#allocation2 + $0x950] sm:$0xff] }
 0x264   : > { %4601 = vmatprep.subr.bf16.mxu1 %v5012_v19  ;;  %4571 = vmatprep.subr.bf16.mxu0 %v4570_v50  ;;  %v2995_v50 = vld [vmem:[#allocation2 + $0x988] sm:$0xff]  ;;  %v3212_v36 = vld [vmem:[#allocation2 + $0xbb0] sm:$0xff] }
 0x265   : > { %4213 = vmatprep.mubr.msk.f32.mxu1 %vm5002_vm0, %v5001_v0  ;;  %v4622_v55 = vpack.c.bf16 %v2995_v50, %v2994_v49 }
 0x266   : > { %4603 = vmatpush3.bf16.msra.mxu1 %v4602_v56  ;;  %v2978_v56 = vld [vmem:[#allocation2 + $0x900] sm:$0xff] }
 0x267   : > { %4573 = vmatpush3.bf16.msra.mxu0 %v4572_v57  ;;  %4604 = vmatprep.subr.bf16.mxu1 %v5012_v19  ;;  %v2979_v57 = vld [vmem:[#allocation2 + $0x908] sm:$0xff] }
 0x268   : > { %4575 = vmatprep.subr.bf16.mxu0 %v4574_v60  ;;  %v4655_v60 = vpack.c.bf16 %v3011_v54, %v3010_v53  ;;  %v4624_v62 = vpack.c.bf16 %v2979_v57, %v2978_v56  ;;  %v4646_v53 = vpack.c.bf16 %v3007_v48, %v3006_v47  ;;  %v2990_v54 = vld [vmem:[#allocation2 + $0x960] sm:$0xff]  ;;  %v3008_v56 = vld [vmem:[#allocation2 + $0x9f0] sm:$0xff]  ;;  %v3009_v57 = vld [vmem:[#allocation2 + $0x9f8] sm:$0xff] }
 0x269   : > { %v3214_v47 = vld [vmem:[#allocation2 + $0xbc0] sm:$0xff]  ;;  %v3215_v48 = vld [vmem:[#allocation2 + $0xbc8] sm:$0xff] }
 0x26a   : > { %4606 = vmatpush3.bf16.msra.mxu1 %v4605_v2  ;;  %v2830_v2 = vrot.slane %v5302_v44, 5 }
 0x26b   : > { %4577 = vmatpush3.bf16.msra.mxu0 %v4576_v3  ;;  %4607 = vmatprep.subr.bf16.mxu1 %v5012_v19  ;;  %v4626_v3 = vpack.c.bf16 %v2997_v59, %v2996_v58 }
 0x26c   : > { %4579 = vmatprep.subr.bf16.mxu0 %v4578_v6  ;;  %v3027_v6 = vrot.slane %v5298_v39, 6 }
 0x26e   : > { %4609 = vmatpush3.bf16.msra.mxu1 %v4608_v11  ;;  %v3014_v11 = vld [vmem:[#allocation2 + $0xa20] sm:$0xff] }
 0x26f   : > { %4581 = vmatpush3.bf16.msra.mxu0 %v4580_v12  ;;  %4610 = vmatprep.subr.bf16.mxu1 %v5012_v19  ;;  %v3015_v12 = vld [vmem:[#allocation2 + $0xa28] sm:$0xff] }
 0x270   : > { %4583 = vmatprep.subr.bf16.mxu0 %v4582_v15  ;;  %v2983_v15 = vld [vmem:[#allocation2 + $0x928] sm:$0xff]  ;;  %v4661_v18 = vpack.c.bf16 %v3015_v12, %v3014_v11  ;;  %v3192_v11 = vld [vmem:[#allocation2 + $0xb10] sm:$0xff]  ;;  %v3193_v12 = vld [vmem:[#allocation2 + $0xb18] sm:$0xff] }
 0x271   : > { %v4632_v20 = vpack.c.bf16 %v2983_v15, %v2982_v14  ;;  %v3028_v14 = vrot.slane %v5300_v40, 6 }
 0x272   : > { %4612 = vmatpush3.bf16.msra.mxu1 %v4611_v21  ;;  %v3016_v21 = vld [vmem:[#allocation2 + $0xa30] sm:$0xff] }
 0x273   : > { %4585 = vmatpush3.bf16.msra.mxu0 %v4584_v22  ;;  %4613 = vmatprep.subr.bf16.mxu1 %v5012_v19  ;;  %v3017_v22 = vld [vmem:[#allocation2 + $0xa38] sm:$0xff] }
 0x274   : > { %4587 = vmatprep.subr.bf16.mxu0 %v4586_v25  ;;  %v2985_v25 = vld [vmem:[#allocation2 + $0x938] sm:$0xff]  ;;  %v4664_v28 = vpack.c.bf16 %v3017_v22, %v3016_v21  ;;  %v3176_v21 = vld [vmem:[#allocation2 + $0xa90] sm:$0xff] }
 0x275   : > { %v4636_v29 = vpack.c.bf16 %v2985_v25, %v2984_v24  ;;  %v3177_v22 = vld [vmem:[#allocation2 + $0xa98] sm:$0xff]  ;;  %v3194_v24 = vld [vmem:[#allocation2 + $0xb20] sm:$0xff]  ;;  %v3195_v25 = vld [vmem:[#allocation2 + $0xb28] sm:$0xff] }
 0x276   : > { %4615 = vmatpush3.bf16.msra.mxu1 %v4614_v30  ;;  %v3018_v30 = vld [vmem:[#allocation2 + $0xa40] sm:$0xff]  ;;  %v4684_v27 = vpack.c.bf16 %v3177_v22, %v3176_v21  ;;  %v3224_v22 = vrot.slane %v5300_v40, 7 }
 0x277   : > { %4589 = vmatpush3.bf16.msra.mxu0 %v4588_v31  ;;  %4616 = vmatprep.subr.bf16.mxu1 %v5012_v19  ;;  %v3019_v31 = vld [vmem:[#allocation2 + $0xa48] sm:$0xff] }
 0x278   : > { %4591 = vmatprep.subr.bf16.mxu0 %v4590_v34  ;;  %v2987_v34 = vld [vmem:[#allocation2 + $0x948] sm:$0xff]  ;;  %v4667_v37 = vpack.c.bf16 %v3019_v31, %v3018_v30  ;;  %v4686_v30 = vpack.c.bf16 %v3195_v25, %v3194_v24  ;;  %v3178_v31 = vld [vmem:[#allocation2 + $0xaa0] sm:$0xff] }
 0x279   : > { %v4640_v38 = vpack.c.bf16 %v2987_v34, %v2986_v33  ;;  %v3196_v33 = vld [vmem:[#allocation2 + $0xb30] sm:$0xff]  ;;  %v3197_v34 = vld [vmem:[#allocation2 + $0xb38] sm:$0xff]  ;;  %v1804_v24 = vld [vmem:[#allocation5] sm:$0x1] }
 0x27a   : > { %4618 = vmatpush3.bf16.msra.mxu1 %v4617_v41  ;;  %v3020_v41 = vld [vmem:[#allocation2 + $0xa50] sm:$0xff] }
 0x27b   : > { %4593 = vmatpush3.bf16.msra.mxu0 %v4592_v42  ;;  %4619 = vmatprep.subr.bf16.mxu1 %v5012_v19  ;;  %v3021_v42 = vld [vmem:[#allocation2 + $0xa58] sm:$0xff] }
 0x27c   : > { %4595 = vmatprep.subr.bf16.mxu0 %v4594_v46  ;;  %v2989_v46 = vld [vmem:[#allocation2 + $0x958] sm:$0xff]  ;;  %v4670_v49 = vpack.c.bf16 %v3021_v42, %v3020_v41  ;;  %v3180_v41 = vld [vmem:[#allocation2 + $0xab0] sm:$0xff] }
 0x27d   : > { %v4644_v50 = vpack.c.bf16 %v2989_v46, %v2988_v45  ;;  %v3181_v42 = vld [vmem:[#allocation2 + $0xab8] sm:$0xff]  ;;  %v3199_v45 = vld [vmem:[#allocation2 + $0xb48] sm:$0xff] }
 0x27e   : > { %4621 = vmatpush3.bf16.msra.mxu1 %v4620_v51  ;;  %v3022_v51 = vld [vmem:[#allocation2 + $0xa60] sm:$0xff] }
 0x27f   : > { %4597 = vmatpush3.bf16.msra.mxu0 %v4596_v52  ;;  %4654 = vmatprep.subr.bf16.mxu1 %v5012_v19  ;;  %v3023_v52 = vld [vmem:[#allocation2 + $0xa68] sm:$0xff] }
 0x280   : > { %4623 = vmatprep.subr.bf16.mxu0 %v4622_v55  ;;  %v2991_v55 = vld [vmem:[#allocation2 + $0x968] sm:$0xff]  ;;  %v4673_v58 = vpack.c.bf16 %v3023_v52, %v3022_v51  ;;  %v3200_v52 = vld [vmem:[#allocation2 + $0xb50] sm:$0xff] }
 0x281   : > { %4214 = vmatmul.mubr.f32.vlgmr.msra.gmra.mrb[2].mxu1 %v2832_v61  ;;  %v4648_v59 = vpack.c.bf16 %v2991_v55, %v2990_v54  ;;  %v3025_v61 = vld [vmem:[#allocation2 + $0xa78] sm:$0xff]  ;;  %v3183_v51 = vld [vmem:[#allocation2 + $0xac8] sm:$0xff]  ;;  %v4723_v54 = vpack.c.bf16 %v3215_v48, %v3214_v47 }
 0x282   : > { %2901 = vmatmul.mubr.f32.vlgmr.msra.gmra.mrb[12].mxu0 %v2830_v2  ;;  %4656 = vmatpush3.bf16.msra.mxu1 %v4655_v60  ;;  %v3024_v60 = vld [vmem:[#allocation2 + $0xa70] sm:$0xff]  ;;  %v3190_v2 = vld [vmem:[#allocation2 + $0xb00] sm:$0xff] }
 0x283   : > { %4625 = vmatpush3.bf16.msra.mxu0 %v4624_v62  ;;  %3096 = vmatprep.mubr.f32.mxu0 %v3027_v6  ;;  %v4650_v62 = vpack.c.bf16 %v3009_v57, %v3008_v56  ;;  %v4676_v4 = vpack.c.bf16 %v3025_v61, %v3024_v60  ;;  %v3206_v6 = vld [vmem:[#allocation2 + $0xb80] sm:$0xff]  ;;  %v3216_v56 = vld [vmem:[#allocation2 + $0xbd0] sm:$0xff]  ;;  %v3217_v57 = vld [vmem:[#allocation2 + $0xbd8] sm:$0xff] }
 0x284   : > { %4657 = vmatprep.subr.bf16.mxu1 %v5012_v19  ;;  %4627 = vmatprep.subr.bf16.mxu0 %v4626_v3  ;;  %v3191_v3 = vld [vmem:[#allocation2 + $0xb08] sm:$0xff]  ;;  %v3185_v60 = vld [vmem:[#allocation2 + $0xad8] sm:$0xff]  ;;  %v3202_v61 = vld [vmem:[#allocation2 + $0xb60] sm:$0xff]  ;;  %v4726_v63 = vpack.c.bf16 %v3217_v57, %v3216_v56 }
 0x285   : > { %4248 = vmatprep.mubr.msk.f32.mxu1 %vm5002_vm0, %v5001_v0  ;;  %v4678_v8 = vpack.c.bf16 %v3191_v3, %v3190_v2  ;;  %v3218_v2 = vld [vmem:[#allocation2 + $0xbe0] sm:$0xff]  ;;  %v3219_v3 = vld [vmem:[#allocation2 + $0xbe8] sm:$0xff] }
 0x286   : > { %4659 = vmatpush3.bf16.msra.mxu1 %v4658_v9  ;;  %v3174_v9 = vld [vmem:[#allocation2 + $0xa80] sm:$0xff] }
 0x287   : > { %4629 = vmatpush3.bf16.msra.mxu0 %v4628_v10  ;;  %4660 = vmatprep.subr.bf16.mxu1 %v5012_v19  ;;  %v3175_v10 = vld [vmem:[#allocation2 + $0xa88] sm:$0xff] }
 0x288   : > { %4631 = vmatprep.subr.bf16.mxu0 %v4630_v13  ;;  %v4711_v13 = vpack.c.bf16 %v3207_v7, %v3206_v6  ;;  %v4680_v15 = vpack.c.bf16 %v3175_v10, %v3174_v9  ;;  %v3187_v6 = vld [vmem:[#allocation2 + $0xae8] sm:$0xff]  ;;  %v3205_v9 = vld [vmem:[#allocation2 + $0xb78] sm:$0xff] }
 0x28a   : > { %4662 = vmatpush3.bf16.msra.mxu1 %v4661_v18  ;;  %v3026_v18 = vrot.slane %v5302_v44, 6 }
 0x28b   : > { %4633 = vmatpush3.bf16.msra.mxu0 %v4632_v20  ;;  %4663 = vmatprep.subr.bf16.mxu1 %v5012_v19  ;;  %v4682_v20 = vpack.c.bf16 %v3193_v12, %v3192_v11  ;;  %v4729_v11 = vpack.c.bf16 %v3219_v3, %v3218_v2 }
 0x28c   : > { %4635 = vmatprep.subr.bf16.mxu0 %v4634_v23  ;;  %v3223_v23 = vrot.slane %v5298_v39, 7 }
 0x28e   : > { %4665 = vmatpush3.bf16.msra.mxu1 %v4664_v28  ;;  %v3210_v28 = vld [vmem:[#allocation2 + $0xba0] sm:$0xff] }
 0x28f   : > { %4637 = vmatpush3.bf16.msra.mxu0 %v4636_v29  ;;  %4666 = vmatprep.subr.bf16.mxu1 %v5012_v19  ;;  %v3211_v29 = vld [vmem:[#allocation2 + $0xba8] sm:$0xff] }
 0x290   : > { %4639 = vmatprep.subr.bf16.mxu0 %v4638_v32  ;;  %v3179_v32 = vld [vmem:[#allocation2 + $0xaa8] sm:$0xff]  ;;  %v4717_v39 = vpack.c.bf16 %v3211_v29, %v3210_v28 }
 0x291   : > { %v4688_v35 = vpack.c.bf16 %v3179_v32, %v3178_v31 }
 0x292   : > { %4668 = vmatpush3.bf16.msra.mxu1 %v4667_v37  ;;  %v3213_v37 = vld [vmem:[#allocation2 + $0xbb8] sm:$0xff] }
 0x293   : > { %4641 = vmatpush3.bf16.msra.mxu0 %v4640_v38  ;;  %4669 = vmatprep.subr.bf16.mxu1 %v5012_v19  ;;  %v4690_v38 = vpack.c.bf16 %v3197_v34, %v3196_v33  ;;  %v4720_v46 = vpack.c.bf16 %v3213_v37, %v3212_v36 }
 0x294   : > { %4643 = vmatprep.subr.bf16.mxu0 %v4642_v43  ;;  %v3198_v43 = vld [vmem:[#allocation2 + $0xb40] sm:$0xff] }
 0x296   : > { %4671 = vmatpush3.bf16.msra.mxu1 %v4670_v49  ;;  %v4694_v49 = vpack.c.bf16 %v3199_v45, %v3198_v43 }
 0x297   : > { %4645 = vmatpush3.bf16.msra.mxu0 %v4644_v50  ;;  %4672 = vmatprep.subr.bf16.mxu1 %v5012_v19  ;;  %v3182_v50 = vld [vmem:[#allocation2 + $0xac0] sm:$0xff] }
 0x298   : > { %4647 = vmatprep.subr.bf16.mxu0 %v4646_v53  ;;  %v3201_v53 = vld [vmem:[#allocation2 + $0xb58] sm:$0xff]  ;;  %v4696_v55 = vpack.c.bf16 %v3183_v51, %v3182_v50 }
 0x29a   : > { %4674 = vmatpush3.bf16.msra.mxu1 %v4673_v58  ;;  %v4698_v58 = vpack.c.bf16 %v3201_v53, %v3200_v52 }
 0x29b   : > { %4649 = vmatpush3.bf16.msra.mxu0 %v4648_v59  ;;  %4675 = vmatprep.subr.bf16.mxu1 %v5012_v19  ;;  %v3184_v59 = vld [vmem:[#allocation2 + $0xad0] sm:$0xff] }
 0x29c   : > { %4651 = vmatprep.subr.bf16.mxu0 %v4650_v62  ;;  %v3203_v62 = vld [vmem:[#allocation2 + $0xb68] sm:$0xff]  ;;  %v4700_v1 = vpack.c.bf16 %v3185_v60, %v3184_v59 }
 0x29e   : > { %4677 = vmatpush3.bf16.msra.mxu1 %v4676_v4  ;;  %v4702_v4 = vpack.c.bf16 %v3203_v62, %v3202_v61 }
 0x29f   : > { %4653 = vmatpush3.bf16.msra.mxu0 %v4652_v5  ;;  %4710 = vmatprep.subr.bf16.mxu1 %v5012_v19  ;;  %v3186_v5 = vld [vmem:[#allocation2 + $0xae0] sm:$0xff] }
 0x2a0   : > { %4679 = vmatprep.subr.bf16.mxu0 %v4678_v8  ;;  %v3204_v8 = vld [vmem:[#allocation2 + $0xb70] sm:$0xff] }
 0x2a1   : > { %4249 = vmatmul.mubr.f32.vlgmr.msra.gmra.mrb[2].mxu1 %v3028_v14  ;;  %v3220_v14 = vld [vmem:[#allocation2 + $0xbf0] sm:$0xff]  ;;  %v4706_v16 = vpack.c.bf16 %v3205_v9, %v3204_v8 }
 0x2a2   : > { %3097 = vmatmul.mubr.f32.vlgmr.msra.gmra.mrb[14].mxu0 %v3026_v18  ;;  %4712 = vmatpush3.bf16.msra.mxu1 %v4711_v13  ;;  %v4704_v13 = vpack.c.bf16 %v3187_v6, %v3186_v5  ;;  %v3189_v18 = vld [vmem:[#allocation2 + $0xaf8] sm:$0xff] }
 0x2a3   : > { %4681 = vmatpush3.bf16.msra.mxu0 %v4680_v15  ;;  %3292 = vmatprep.mubr.f32.mxu0 %v3223_v23  ;;  %v3221_v15 = vld [vmem:[#allocation2 + $0xbf8] sm:$0xff]  ;;  %v4708_v21 = vpack.c.bf16 %v3189_v18, %v3188_v17  ;;  %v3222_v23 = vrot.slane %v5302_v44, 7 }
 0x2a4   : > { %4713 = vmatprep.subr.bf16.mxu1 %v5012_v19  ;;  %4683 = vmatprep.subr.bf16.mxu0 %v4682_v20  ;;  %v4732_v20 = vpack.c.bf16 %v3221_v15, %v3220_v14 }
 0x2a5   : > { %4283 = vmatprep.mubr.msk.f32.mxu1 %vm5002_vm0, %v5001_v0  ;;  %v4692_v0 = vpack.c.bf16 %v3181_v42, %v3180_v41 }
 0x2a6   : > { %4715 = vmatpush3.bf16.msra.mxu1 %v4714_v26 }
 0x2a7   : > { %4685 = vmatpush3.bf16.msra.mxu0 %v4684_v27  ;;  %4716 = vmatprep.subr.bf16.mxu1 %v5012_v19 }
 0x2a8   : > { %4687 = vmatprep.subr.bf16.mxu0 %v4686_v30 }
 0x2aa   : > { %4718 = vmatpush3.bf16.msra.mxu1 %v4717_v39 }
 0x2ab   : > { %4689 = vmatpush3.bf16.msra.mxu0 %v4688_v35  ;;  %4719 = vmatprep.subr.bf16.mxu1 %v5012_v19 }
 0x2ac   : > { %4691 = vmatprep.subr.bf16.mxu0 %v4690_v38 }
 0x2ae   : > { %4721 = vmatpush3.bf16.msra.mxu1 %v4720_v46 }
 0x2af   : > { %4693 = vmatpush3.bf16.msra.mxu0 %v4692_v0  ;;  %4722 = vmatprep.subr.bf16.mxu1 %v5012_v19 }
 0x2b0   : > { %4695 = vmatprep.subr.bf16.mxu0 %v4694_v49 }
 0x2b2   : > { %4724 = vmatpush3.bf16.msra.mxu1 %v4723_v54 }
 0x2b3   : > { %4697 = vmatpush3.bf16.msra.mxu0 %v4696_v55  ;;  %4725 = vmatprep.subr.bf16.mxu1 %v5012_v19 }
 0x2b4   : > { %4699 = vmatprep.subr.bf16.mxu0 %v4698_v58 }
 0x2b5   : > { %v3577_v7 = vpop.f32.mrb[2].mxu0 }
 0x2b6   : > { %4727 = vmatpush3.bf16.msra.mxu1 %v4726_v63  ;;  %v3578_v10 = vpop.f32.mrb[3].mxu0 }
 0x2b7   : > { %v3579_v12 = vadd.f32 %v3578_v10, %v3577_v7  ;;  %4701 = vmatpush3.bf16.msra.mxu0 %v4700_v1  ;;  %4728 = vmatprep.subr.bf16.mxu1 %v5012_v19 }
 0x2b8   : > { %4703 = vmatprep.subr.bf16.mxu0 %v4702_v4 }
 0x2b9   : > { %v4737_v27 = vadd.f32 %v3579_v12, %v1804_v24 }
 0x2ba   : > { %4730 = vmatpush3.bf16.msra.mxu1 %v4729_v11 }
 0x2bb   : > { %4705 = vmatpush3.bf16.msra.mxu0 %v4704_v13  ;;  %4731 = vmatprep.subr.bf16.mxu1 %v5012_v19 }
 0x2bc   : > { %4707 = vmatprep.subr.bf16.mxu0 %v4706_v16 }
 0x2be   : > { %4733 = vmatpush3.bf16.msra.mxu1 %v4732_v20 }
 0x2bf   : > { %4709 = vmatpush3.bf16.msra.mxu0 %v4708_v21 }
 0x2c1   : > { %4284 = vmatmul.mubr.f32.vlgmr.msra.gmra.mrb[2].mxu1 %v3224_v22 }
 0x2c2   : > { %3293 = vmatmul.mubr.f32.vlgmr.msra.gmra.mrb[16].mxu0 %v3222_v23 }
 0x2d5   : > { %v3629_v25 = vpop.f32.mrb[4].mxu0 }
 0x2d6   : > { %v3630_v26 = vpop.f32.mrb[5].mxu0 }
 0x2d7   : > { %v3631_v28 = vadd.f32 %v3630_v26, %v3629_v25 }
 0x2d9   : > { %v4738_v29 = vadd.f32 %v4737_v27, %v3631_v28 }
 0x2f5   : > { %v3681_v30 = vpop.f32.mrb[6].mxu0 }
 0x2f6   : > { %v3682_v31 = vpop.f32.mrb[7].mxu0 }
 0x2f7   : > { %v3683_v32 = vadd.f32 %v3682_v31, %v3681_v30 }
 0x2f9   : > { %v4739_v19 = vadd.f32 %v4738_v29, %v3683_v32 }
 0x315   : > { %v3733_v33 = vpop.f32.mrb[8].mxu0 }
 0x316   : > { %v3734_v34 = vpop.f32.mrb[9].mxu0 }
 0x317   : > { %v3735_v39 = vadd.f32 %v3734_v34, %v3733_v33 }
 0x319   : > { %v4740_v35 = vadd.f32 %v4739_v19, %v3735_v39 }
 0x335   : > { %v3785_v40 = vpop.f32.mrb[10].mxu0 }
 0x336   : > { %v3786_v36 = vpop.f32.mrb[11].mxu0 }
 0x337   : > { %v3787_v44 = vadd.f32 %v3786_v36, %v3785_v40 }
 0x339   : > { %v4741_v37 = vadd.f32 %v4740_v35, %v3787_v44 }
 0x355   : > { %v3837_v38 = vpop.f32.mrb[12].mxu0 }
 0x356   : > { %v3838_v41 = vpop.f32.mrb[13].mxu0 }
 0x357   : > { %v3839_v42 = vadd.f32 %v3838_v41, %v3837_v38 }
 0x359   : > { %v4742_v43 = vadd.f32 %v4741_v37, %v3839_v42 }
 0x375   : > { %v3889_v45 = vpop.f32.mrb[14].mxu0 }
 0x376   : > { %v3890_v46 = vpop.f32.mrb[15].mxu0 }
 0x377   : > { %v3891_v0 = vadd.f32 %v3890_v46, %v3889_v45 }
 0x379   : > { %v4743_v47 = vadd.f32 %v4742_v43, %v3891_v0 }
 0x394   : > { %v3364_v48 = vpop.f32.mrb[2].mxu1 }
 0x395   : > { %v3941_v49 = vpop.f32.mrb[16].mxu0  ;;  %v4285_v50 = vpop.f32.mrb[3].mxu1 }
 0x396   : > { %v3942_v51 = vpop.f32.mrb[17].mxu0 }
 0x397   : > { %v3943_v52 = vadd.f32 %v3942_v51, %v3941_v49 }
 0x399   : > { %v4744_v53 = vadd.f32 %v4743_v47, %v3943_v52 }
 0x39b   : > { %v4745_v54 = vadd.f32 %v4744_v53, %v3364_v48 }
 0x39d   : > { %3369 = vst [vmem:[%s244_s6] sm:$0x1] %v4745_v54 }
 0x39e   : > { %4938 = shalt.err (!%p4935_p11)
}
 0x39f   : > { %s4939_s7 = scalar_lea.hbm %s5402_s13, 16  ;;  %s4943_s26 = scalar_lea.hbm %s5449_s5, 32 }
 0x3a0   : > { %p4940_p13 = scmp.ne.s32.totalorder %s5402_s13, %s4939_s7  ;;  %p4944_p6 = scmp.lt.u32.totalorder %s5402_s13, %s5449_s5 }
 0x3a1   : > { %p4945_p9 = scmp.lt.u32.totalorder %s4943_s26, %s4939_s7  ;;  %p4947_p12 = scmp.lt.u32.totalorder %s4939_s7, %s5402_s13 }
 0x3a2   : > { %p4941_p0 = pnand %p4940_p13, %p5462_p1 }
 0x3a3   : > { %p4946_p10 = por %p4945_p9, %p4944_p6 }
 0x3a4   : > { %p4942_p5 = pneg %p4941_p0 }
 0x3a5   : > { %p4948_p2 = por %p4947_p12, %p4946_p10 }
 0x3a7   : > { %p4949_p3 = pnand %p4948_p2, %p4942_p5 }
 0x3a9   : > { %4952 = shalt.err (!%p4949_p3)
}
 0x3aa   : > { %4800 = dma.vmem_to_hbm [thread:$0]  (%p5462_p1), %s5404_s9, 16, %s5402_s13, %s3371_s14  }
 0x3ab PF: > { %p4817_p4 = scmp.ge.s32.totalorder %s4995_s21, 2  ;;  %s3395_s10 = sand.u32 1, %s4983_s18  }
 0x3ac   : > { %p5463_p7 = scmp.ne.s32.totalorder %s5454_s29, 0  ;;  %s3396_s6 = scalar_lea.sflag [#allocation4], %s3395_s10 }
 0x3ae   : > { %p4810_p8 = pnand %p4817_p4, %p5463_p7 }
 0x3b0   : > { %4978 = dma.done.wait (!%p4810_p8), %s3396_s6, 16  }
 0x3b1   : > { %4980 = vsyncadd (!%p4810_p8), %s3396_s6, 4294967280  ;;  %p17_p11 = scmp.ge.s32.totalorder %s5069_s24, 4   ;;  %s5464_s18 = smov %s4987_s19 }
 0x3b2   : > { %s5465_s19 = smov %s4991_s20  ;;  %s5466_s20 = smov %s5080_s27 }
 0x3b3   : > { %s5467_s21 = smov %s5069_s24  ;;  %19 = sbr.rel (!%p17_p11) target bundleno = 5 (0x5), region = 99 }
 0x3ba   :  { %3400 = vsyncpa [#allocation3], 1 }
 0x3bb   :  { %3402 = vsyncpa [#allocation3 + $0x1], 1 }
 0x3bc   :  { %3403 = vsyncpa [#allocation6], 1 }
 0x3bd   :  { %3404 = vsyncpa [#allocation4], 1 }
 0x3be   :  { %3406 = vsyncpa [#allocation4 + $0x1], 1 }

</bundles_post_ra>
